<compile_context>
chip_gen: v6e
topology: v6e:2x2x1
jax: 0.10.0
libtpu: 0.0.40
codegen_flags: <defaults>
</compile_context>

<pallas_src>
import math
import jax
import jax.numpy as jnp
import numpy as np
from jax.experimental import pallas as pl
from jax.experimental.pallas import tpu as pltpu

HIDDEN = 512       # module default hidden_size
OUT = 8            # module default output_size
OUT_PAD = 128      # lane-dense padded output width (multiple of 128)
MAX_BLOCK_ROWS = 256   # MXU height on v6e/v7x; two clean 128-passes on v5e


def value_head_kernel(x_ref, w1_ref, b1_ref, w2_ref, b2_ref, w3_ref, b3_ref,
                      out_ref):
    """Fused MLP forward for one block of rows: (TM, D) -> (TM, OUT_PAD).

    x and all weights arrive as bf16 (MXU-native); accumulation, bias-add and
    ReLU are f32.
    """
    x = x_ref[...]                                                   # (TM, D) bf16

    # layer 0: Linear(D, H) + ReLU
    h = jnp.dot(x, w1_ref[...], preferred_element_type=jnp.float32) + b1_ref[...]
    h = jnp.maximum(h, 0.0)

    # layers 1 and 2: the SAME Linear(H, H) + ReLU applied twice (shared weights)
    h = jnp.dot(h.astype(jnp.bfloat16), w2_ref[...],
                preferred_element_type=jnp.float32) + b2_ref[...]
    h = jnp.maximum(h, 0.0)
    h = jnp.dot(h.astype(jnp.bfloat16), w2_ref[...],
                preferred_element_type=jnp.float32) + b2_ref[...]
    h = jnp.maximum(h, 0.0)

    # final Linear(H, OUT) padded to OUT_PAD columns -> lane-dense store
    out_ref[...] = (jnp.dot(h.astype(jnp.bfloat16), w3_ref[...],
                            preferred_element_type=jnp.float32) + b3_ref[...])


def prepare_params(params):
    """One-time packing: transpose to (in, out), pad final layer to 128 lanes,
    cast weights to bf16 (biases stay f32).  Run once at init, not per call."""
    w1, b1, w2, b2, w3, b3 = params
    H = w1.shape[0]
    O = w3.shape[0]
    w1t = jnp.asarray(w1.T, jnp.bfloat16)                              # (D, H)
    w2t = jnp.asarray(w2.T, jnp.bfloat16)                              # (H, H)
    w3p = (jnp.zeros((H, OUT_PAD), jnp.float32).at[:, :O].set(w3.T)
           ).astype(jnp.bfloat16)                                      # (H, 128)
    b1r = jnp.asarray(b1, jnp.float32).reshape(1, H)
    b2r = jnp.asarray(b2, jnp.float32).reshape(1, H)
    b3p = jnp.zeros((1, OUT_PAD), jnp.float32).at[:, :O].set(b3)
    return (w1t, b1r, w2t, b2r, w3p, b3p), O


def _pick_block_rows(n):
    """Row tile: MXU-height (256) when the batch allows, 128 for medium
    batches, otherwise one block covering all rows (rounded up to 8)."""
    if n >= MAX_BLOCK_ROWS:
        return MAX_BLOCK_ROWS
    if n >= 128:
        return 128
    return max(8, ((n + 7) // 8) * 8)


def _value_head_impl(x, packed):
    """x: (N, D) f32; packed: output of prepare_params."""
    w1t, b1r, w2t, b2r, w3p, b3p = packed
    N, D = x.shape
    H = w1t.shape[1]

    block_rows = _pick_block_rows(N)
    num_blocks = pl.cdiv(N, block_rows)
    # Only shard across TensorCores when each core gets a full-size block;
    # otherwise the split just duplicates the weight DMA (weight-fetch bound).
    semantics = ("parallel",) if (num_blocks >= 2 and block_rows >= 128) \
        else ("arbitrary",)

    x_bf16 = x.astype(jnp.bfloat16)   # halves HBM read of activations

    full = lambda i: (0, 0)   # weights/biases: same block every step (no re-DMA)

    out_padded = pl.pallas_call(
        value_head_kernel,
        out_shape=jax.ShapeDtypeStruct((N, OUT_PAD), jnp.float32),
        grid=(num_blocks,),
        in_specs=[
            pl.BlockSpec((block_rows, D), lambda i: (i, 0)),   # x rows (bf16)
            pl.BlockSpec((D, H), full),                        # W1^T  (bf16)
            pl.BlockSpec((1, H), full),                        # b1    (f32)
            pl.BlockSpec((H, H), full),                        # W2^T  (bf16, shared)
            pl.BlockSpec((1, H), full),                        # b2    (f32)
            pl.BlockSpec((H, OUT_PAD), full),                  # W3^T padded (bf16)
            pl.BlockSpec((1, OUT_PAD), full),                  # b3 padded   (f32)
        ],
        out_specs=pl.BlockSpec((block_rows, OUT_PAD), lambda i: (i, 0)),
        compiler_params=pltpu.CompilerParams(
            dimension_semantics=semantics,
            vmem_limit_bytes=32 * 1024 * 1024,
        ),
    )(x_bf16, w1t, b1r, w2t, b2r, w3p, b3p)

    return out_padded


_value_head_jit = jax.jit(_value_head_impl)


def value_head(x, packed, out_size=OUT):
    """Full forward: fused kernel + slice of the lane-padded output."""
    return _value_head_jit(x, packed)[:, :out_size]


def ref_value_head(x, params):
    """Pure-JAX f32 reference matching the PyTorch module (incl. shared layer)."""
    w1, b1, w2, b2, w3, b3 = params
    h = jnp.maximum(x @ w1.T + b1, 0.0)
    h = jnp.maximum(h @ w2.T + b2, 0.0)
    h = jnp.maximum(h @ w2.T + b2, 0.0)   # same weights again (shared module)
    return h @ w3.T + b3


def init_params(key, input_size, hidden=HIDDEN, output=OUT):
    """torch.nn.Linear default init: U(-1/sqrt(fan_in), 1/sqrt(fan_in))."""
    def linear(k, fan_in, fan_out):
        kw, kb = jax.random.split(k)
        s = 1.0 / math.sqrt(fan_in)
        w = jax.random.uniform(kw, (fan_out, fan_in), jnp.float32, -s, s)
        b = jax.random.uniform(kb, (fan_out,), jnp.float32, -s, s)
        return w, b

    k1, k2, k3 = jax.random.split(key, 3)
    w1, b1 = linear(k1, input_size, hidden)   # layers[0]
    w2, b2 = linear(k2, hidden, hidden)       # layers[1] == layers[2] (shared)
    w3, b3 = linear(k3, hidden, output)       # final linear
    return (w1, b1, w2, b2, w3, b3)


if __name__ == "__main__":
    N, D = 16, 256                        # batch rows, input_size (hidden=512, out=8)
    key = jax.random.PRNGKey(0)
    kx, kp = jax.random.split(key)
    x = jax.random.normal(kx, (N, D), jnp.float32)
    params = init_params(kp, D)

    packed, out_size = prepare_params(params)   # one-time weight packing
    y = value_head(x, packed, out_size)
    jax.block_until_ready(y)

    assert y.shape == (N, OUT), y.shape
    y_ref = ref_value_head(x, params)
    np.testing.assert_allclose(np.asarray(y), np.asarray(y_ref),
                               rtol=2e-2, atol=2e-2)
    print("KERNEL_OK")
</pallas_src>

<mosaic_0001>
module attributes {stable_mosaic.version = 11 : i64} {
  func.func @value_head_kernel(%arg0: i32, %arg1: memref<16x256xbf16, #tpu.memory_space<vmem>>, %arg2: memref<256x512xbf16, #tpu.memory_space<vmem>>, %arg3: memref<1x512xf32, #tpu.memory_space<vmem>>, %arg4: memref<512x512xbf16, #tpu.memory_space<vmem>>, %arg5: memref<1x512xf32, #tpu.memory_space<vmem>>, %arg6: memref<512x128xbf16, #tpu.memory_space<vmem>>, %arg7: memref<1x128xf32, #tpu.memory_space<vmem>>, %arg8: memref<16x128xf32, #tpu.memory_space<vmem>>) attributes {dimension_semantics = [#tpu.dimension_semantics<arbitrary>], iteration_bounds = array<i64: 1>, scalar_prefetch = 0 : i64, scratch_operands = 0 : i64, tpu.core_type = #tpu.core_type<tc>, window_params = [{transform_indices = @transform_0, window_bounds = array<i64: 16, 256>}, {pipeline_mode = #tpu.pipeline_mode<synchronous>, transform_indices = @transform_1, window_bounds = array<i64: 256, 512>}, {pipeline_mode = #tpu.pipeline_mode<synchronous>, transform_indices = @transform_2, window_bounds = array<i64: 1, 512>}, {pipeline_mode = #tpu.pipeline_mode<synchronous>, transform_indices = @transform_3, window_bounds = array<i64: 512, 512>}, {pipeline_mode = #tpu.pipeline_mode<synchronous>, transform_indices = @transform_4, window_bounds = array<i64: 1, 512>}, {pipeline_mode = #tpu.pipeline_mode<synchronous>, transform_indices = @transform_5, window_bounds = array<i64: 512, 128>}, {pipeline_mode = #tpu.pipeline_mode<synchronous>, transform_indices = @transform_6, window_bounds = array<i64: 1, 128>}, {transform_indices = @transform_7, window_bounds = array<i64: 16, 128>}]} {
    %c0 = arith.constant 0 : index
    %c0_0 = arith.constant 0 : index
    %0 = vector.load %arg1[%c0, %c0_0] : memref<16x256xbf16, #tpu.memory_space<vmem>>, vector<16x256xbf16>
    %c0_1 = arith.constant 0 : index
    %c0_2 = arith.constant 0 : index
    %1 = vector.load %arg2[%c0_1, %c0_2] : memref<256x512xbf16, #tpu.memory_space<vmem>>, vector<256x512xbf16>
    %cst = arith.constant dense<0.000000e+00> : vector<16x512xf32>
    %2 = tpu.matmul %0, %1, %cst {dimension_numbers = #tpu.dot_dimension_numbers<[1], [0], [0], [1], [0, 0, 1, 1], [], []>} : vector<16x256xbf16>, vector<256x512xbf16>, vector<16x512xf32> -> vector<16x512xf32>
    %c0_3 = arith.constant 0 : index
    %c0_4 = arith.constant 0 : index
    %3 = vector.load %arg3[%c0_3, %c0_4] : memref<1x512xf32, #tpu.memory_space<vmem>>, vector<1x512xf32>
    %4 = vector.broadcast %3 : vector<1x512xf32> to vector<16x512xf32>
    %5 = arith.addf %2, %4 : vector<16x512xf32>
    %cst_5 = arith.constant 0.000000e+00 : f32
    %6 = vector.broadcast %cst_5 : f32 to vector<16x512xf32>
    %7 = arith.maximumf %5, %6 : vector<16x512xf32>
    %8 = arith.truncf %7 : vector<16x512xf32> to vector<16x512xbf16>
    %c0_6 = arith.constant 0 : index
    %c0_7 = arith.constant 0 : index
    %9 = vector.load %arg4[%c0_6, %c0_7] : memref<512x512xbf16, #tpu.memory_space<vmem>>, vector<512x512xbf16>
    %cst_8 = arith.constant dense<0.000000e+00> : vector<16x512xf32>
    %10 = tpu.matmul %8, %9, %cst_8 {dimension_numbers = #tpu.dot_dimension_numbers<[1], [0], [0], [1], [0, 0, 1, 1], [], []>} : vector<16x512xbf16>, vector<512x512xbf16>, vector<16x512xf32> -> vector<16x512xf32>
    %c0_9 = arith.constant 0 : index
    %c0_10 = arith.constant 0 : index
    %11 = vector.load %arg5[%c0_9, %c0_10] : memref<1x512xf32, #tpu.memory_space<vmem>>, vector<1x512xf32>
    %12 = vector.broadcast %11 : vector<1x512xf32> to vector<16x512xf32>
    %13 = arith.addf %10, %12 : vector<16x512xf32>
    %cst_11 = arith.constant 0.000000e+00 : f32
    %14 = vector.broadcast %cst_11 : f32 to vector<16x512xf32>
    %15 = arith.maximumf %13, %14 : vector<16x512xf32>
    %16 = arith.truncf %15 : vector<16x512xf32> to vector<16x512xbf16>
    %c0_12 = arith.constant 0 : index
    %c0_13 = arith.constant 0 : index
    %17 = vector.load %arg4[%c0_12, %c0_13] : memref<512x512xbf16, #tpu.memory_space<vmem>>, vector<512x512xbf16>
    %cst_14 = arith.constant dense<0.000000e+00> : vector<16x512xf32>
    %18 = tpu.matmul %16, %17, %cst_14 {dimension_numbers = #tpu.dot_dimension_numbers<[1], [0], [0], [1], [0, 0, 1, 1], [], []>} : vector<16x512xbf16>, vector<512x512xbf16>, vector<16x512xf32> -> vector<16x512xf32>
    %c0_15 = arith.constant 0 : index
    %c0_16 = arith.constant 0 : index
    %19 = vector.load %arg5[%c0_15, %c0_16] : memref<1x512xf32, #tpu.memory_space<vmem>>, vector<1x512xf32>
    %20 = vector.broadcast %19 : vector<1x512xf32> to vector<16x512xf32>
    %21 = arith.addf %18, %20 : vector<16x512xf32>
    %cst_17 = arith.constant 0.000000e+00 : f32
    %22 = vector.broadcast %cst_17 : f32 to vector<16x512xf32>
    %23 = arith.maximumf %21, %22 : vector<16x512xf32>
    %24 = arith.truncf %23 : vector<16x512xf32> to vector<16x512xbf16>
    %c0_18 = arith.constant 0 : index
    %c0_19 = arith.constant 0 : index
    %25 = vector.load %arg6[%c0_18, %c0_19] : memref<512x128xbf16, #tpu.memory_space<vmem>>, vector<512x128xbf16>
    %cst_20 = arith.constant dense<0.000000e+00> : vector<16x128xf32>
    %26 = tpu.matmul %24, %25, %cst_20 {dimension_numbers = #tpu.dot_dimension_numbers<[1], [0], [0], [1], [0, 0, 1, 1], [], []>} : vector<16x512xbf16>, vector<512x128xbf16>, vector<16x128xf32> -> vector<16x128xf32>
    %c0_21 = arith.constant 0 : index
    %c0_22 = arith.constant 0 : index
    %27 = vector.load %arg7[%c0_21, %c0_22] : memref<1x128xf32, #tpu.memory_space<vmem>>, vector<1x128xf32>
    %28 = vector.broadcast %27 : vector<1x128xf32> to vector<16x128xf32>
    %29 = arith.addf %26, %28 : vector<16x128xf32>
    %c0_23 = arith.constant 0 : index
    %c0_24 = arith.constant 0 : index
    %30 = vector.load %arg8[%c0_23, %c0_24] : memref<16x128xf32, #tpu.memory_space<vmem>>, vector<16x128xf32>
    tpu.vector_store %arg8[%c0_23, %c0_24], %29 {strides = array<i32>} : memref<16x128xf32, #tpu.memory_space<vmem>>, vector<16x128xf32>,
    return
  }
  func.func @transform_0(%arg0: i32) -> (i32, i32) {
    %c0_i32 = arith.constant 0 : i32
    %c0_i32_0 = arith.constant 0 : i32
    return %arg0, %c0_i32 : i32, i32
  }
  func.func @transform_1(%arg0: i32) -> (i32, i32) {
    %c0_i32 = arith.constant 0 : i32
    %c0_i32_0 = arith.constant 0 : i32
    %c0_i32_1 = arith.constant 0 : i32
    return %c0_i32, %c0_i32_0 : i32, i32
  }
  func.func @transform_2(%arg0: i32) -> (i32, i32) {
    %c0_i32 = arith.constant 0 : i32
    %c0_i32_0 = arith.constant 0 : i32
    %c0_i32_1 = arith.constant 0 : i32
    return %c0_i32, %c0_i32_0 : i32, i32
  }
  func.func @transform_3(%arg0: i32) -> (i32, i32) {
    %c0_i32 = arith.constant 0 : i32
    %c0_i32_0 = arith.constant 0 : i32
    %c0_i32_1 = arith.constant 0 : i32
    return %c0_i32, %c0_i32_0 : i32, i32
  }
  func.func @transform_4(%arg0: i32) -> (i32, i32) {
    %c0_i32 = arith.constant 0 : i32
    %c0_i32_0 = arith.constant 0 : i32
    %c0_i32_1 = arith.constant 0 : i32
    return %c0_i32, %c0_i32_0 : i32, i32
  }
  func.func @transform_5(%arg0: i32) -> (i32, i32) {
    %c0_i32 = arith.constant 0 : i32
    %c0_i32_0 = arith.constant 0 : i32
    %c0_i32_1 = arith.constant 0 : i32
    return %c0_i32, %c0_i32_0 : i32, i32
  }
  func.func @transform_6(%arg0: i32) -> (i32, i32) {
    %c0_i32 = arith.constant 0 : i32
    %c0_i32_0 = arith.constant 0 : i32
    %c0_i32_1 = arith.constant 0 : i32
    return %c0_i32, %c0_i32_0 : i32, i32
  }
  func.func @transform_7(%arg0: i32) -> (i32, i32) {
    %c0_i32 = arith.constant 0 : i32
    %c0_i32_0 = arith.constant 0 : i32
    return %arg0, %c0_i32 : i32, i32
  }
}

</mosaic_0001>

<bundles_post_ra>
// kernel: _value_head_impl.1
= control target key start
LH: loop header
LB: loop body
LE: loop exit
PB: predicated region body
PF: predicated region fallthrough
CT: control target
= control target key end

     0   :  { %12 = vsyncpa [#allocation3], 0  ;;  %s3439_s0 = inlined_call_operand.vmem [shape: bf16[16,256], index: 0, kind: input, shape index: {}]   ;;  %s3440_s1 = inlined_call_operand.hbm [shape: bf16[256,512], index: 1, kind: input, shape index: {}]   ;;  %s3441_s2 = inlined_call_operand.vmem [shape: f32[1,512], index: 2, kind: input, shape index: {}]   ;;  %s3442_s3 = inlined_call_operand.hbm [shape: bf16[512,512], index: 3, kind: input, shape index: {}]   ;;  %s3443_s4 = inlined_call_operand.vmem [shape: f32[1,512], index: 4, kind: input, shape index: {}]   ;;  %s3444_s5 = inlined_call_operand.hbm [shape: bf16[512,128], index: 5, kind: input, shape index: {}]   ;;  %s3445_s6 = inlined_call_operand.vmem [shape: f32[1,128], index: 6, kind: input, shape index: {}]   ;;  %s3446_s7 = inlined_call_operand.hbm [shape: f32[16,128], index: 7, kind: output, shape index: {}]  }
   0x1   :  { %13 = vsyncpa [#allocation6], 0 }
   0x2   :  { %14 = vsyncpa [#allocation4], 0  ;;  %s2798_s24 = smov [#allocation5]   ;;  %s2799_s26 = smov [#allocation2]  }
   0x3   :  { %s36_s25 = sshll.u32 %s2798_s24, 4  ;;  %s22_s27 = sshll.u32 %s2799_s26, 4  ;;  %s37_s25 = int_to_ptr.vmem [resolvable:$true] %s36_s25  ;;  %s23_s27 = int_to_ptr.vmem [resolvable:$true] %s22_s27 }
   0x4   :  { %s2720_s28 = scalar_lea.vmem %s37_s25, 16384  ;;  %p2725_p1 = scmp.lt.s32.totalorder %s37_s25, %s37_s25 }
   0x5   :  { %p2721_p0 = scmp.ne.s32.totalorder %s37_s25, %s2720_s28  ;;  %p2726_p2 = scmp.lt.s32.totalorder %s2720_s28, %s2720_s28 }
   0x7   :  { %p2727_p3 = por %p2726_p2, %p2725_p1 }
   0x9   :  { %p2728_p4 = pnand %p2727_p3, %p2721_p0 }
   0xb   :  { %2731 = shalt.err (!%p2728_p4)
}
   0xc   :  { %s2800_s29 = smov 256   ;;  %s2801_s30 = smov 16  }
   0xd   :  { %42 = dma.hbm_to_vmem [thread:$0]  %s3442_s3, 16384, %s37_s25, [#allocation6], %s2800_s29, %s2800_s29, %s2801_s30  }
   0xe   :  { %s2740_s10 = scalar_lea.vmem %s23_s27, 8192  ;;  %p2745_p6 = scmp.lt.s32.totalorder %s23_s27, %s23_s27 }
   0xf   :  { %p2741_p5 = scmp.ne.s32.totalorder %s23_s27, %s2740_s10  ;;  %p2746_p7 = scmp.lt.s32.totalorder %s2740_s10, %s2740_s10 }
  0x11   :  { %p2747_p8 = por %p2746_p7, %p2745_p6 }
  0x13   :  { %p2748_p9 = pnand %p2747_p8, %p2741_p5 }
  0x15   :  { %2751 = shalt.err (!%p2748_p9)
}
  0x16   :  { %28 = dma.hbm_to_vmem [thread:$0]  %s3440_s1, 8192, %s23_s27, [#allocation3], %s2800_s29, %s2800_s29, %s2801_s30  }
  0x17   :  { %s2802_s13 = smov [#allocation7]  }
  0x18   :  { %s50_s14 = sshll.u32 %s2802_s13, 4  ;;  %s51_s14 = int_to_ptr.vmem [resolvable:$true] %s50_s14 }
  0x19   :  { %s2760_s15 = scalar_lea.vmem %s51_s14, 4096  ;;  %p2765_p11 = scmp.lt.s32.totalorder %s51_s14, %s51_s14 }
  0x1a   :  { %p2761_p10 = scmp.ne.s32.totalorder %s51_s14, %s2760_s15  ;;  %p2766_p12 = scmp.lt.s32.totalorder %s2760_s15, %s2760_s15 }
  0x1c   :  { %p2767_p13 = por %p2766_p12, %p2765_p11 }
  0x1e   :  { %p2768_p0 = pnand %p2767_p13, %p2761_p10 }
  0x20   :  { %2771 = shalt.err (!%p2768_p0)
}
  0x21   :  { %s2803_s3 = smov 64   ;;  %s2804_s16 = smov 4  }
  0x22   :  { %56 = dma.hbm_to_vmem [thread:$0]  %s3444_s5, 4096, %s51_s14, [#allocation6], %s2803_s3, %s2803_s3, %s2804_s16  }
  0x23   :  { %2792 = dma.done.wait [#allocation3], 8192  }
  0x24   :  { %2793 = vsyncadd [#allocation3], 4294959104 }
  0x25   :  { %2794 = dma.done.wait [#allocation6], 20480  }
  0x26   :  { %2795 = vsyncadd [#allocation6], 4294946816  ;;  %v2389_v0 = vld [vmem:[#allocation2 + $0xe4] ss:$16 sps:$4 sm:$0xff]   ;;  %v2391_v1 = vld [vmem:[#allocation2 + $0xec] ss:$16 sps:$4 sm:$0xff]  }
  0x27   :  { %487 = vmatprep.subr.bf16.mxu0 %v2389_v0  ;;  %v2393_v2 = vld [vmem:[#allocation2 + $0xe0] ss:$16 sps:$4 sm:$0xff]   ;;  %v2394_v3 = vld [vmem:[#allocation2 + $0xe8] ss:$16 sps:$4 sm:$0xff]   ;;  %530 = vmatprep.subr.bf16.mxu1 %v2391_v1  ;;  %v2395_v4 = vld [vmem:[#allocation2 + $0xc4] ss:$16 sps:$4 sm:$0xff]  }
  0x28   :  { %488 = vmatpush1.bf16.msra.mxu0 %v2393_v2  ;;  %531 = vmatpush1.bf16.msra.mxu1 %v2394_v3  ;;  %v2397_v5 = vld [vmem:[#allocation2 + $0xcc] ss:$16 sps:$4 sm:$0xff]   ;;  %v2399_v6 = vld [vmem:[#allocation2 + $0xc0] ss:$16 sps:$4 sm:$0xff]   ;;  %v2400_v7 = vld [vmem:[#allocation2 + $0xc8] ss:$16 sps:$4 sm:$0xff]  }
  0x29   :  { %489 = vmatprep.subr.bf16.mxu0 %v2395_v4  ;;  %532 = vmatprep.subr.bf16.mxu1 %v2397_v5  ;;  %v2401_v8 = vld [vmem:[#allocation2 + $0xa4] ss:$16 sps:$4 sm:$0xff]   ;;  %v2403_v9 = vld [vmem:[#allocation2 + $0xac] ss:$16 sps:$4 sm:$0xff]   ;;  %v2405_v10 = vld [vmem:[#allocation2 + $0xa0] ss:$16 sps:$4 sm:$0xff]  }
  0x2a   :  { %v2406_v11 = vld [vmem:[#allocation2 + $0xa8] ss:$16 sps:$4 sm:$0xff]   ;;  %v2407_v12 = vld [vmem:[#allocation2 + $0x84] ss:$16 sps:$4 sm:$0xff]   ;;  %v2409_v13 = vld [vmem:[#allocation2 + $0x8c] ss:$16 sps:$4 sm:$0xff]  }
  0x2b   :  { %v2411_v14 = vld [vmem:[#allocation2 + $0x80] ss:$16 sps:$4 sm:$0xff]   ;;  %v2412_v15 = vld [vmem:[#allocation2 + $0x88] ss:$16 sps:$4 sm:$0xff]   ;;  %v2413_v16 = vld [vmem:[#allocation2 + $0x64] ss:$16 sps:$4 sm:$0xff]  }
  0x2c   :  { %490 = vmatpush1.bf16.msra.mxu0 %v2399_v6  ;;  %533 = vmatpush1.bf16.msra.mxu1 %v2400_v7  ;;  %v2415_v17 = vld [vmem:[#allocation2 + $0x6c] ss:$16 sps:$4 sm:$0xff]   ;;  %v2417_v18 = vld [vmem:[#allocation2 + $0x60] ss:$16 sps:$4 sm:$0xff]   ;;  %v2418_v19 = vld [vmem:[#allocation2 + $0x68] ss:$16 sps:$4 sm:$0xff]  }
  0x2d   :  { %491 = vmatprep.subr.bf16.mxu0 %v2401_v8  ;;  %534 = vmatprep.subr.bf16.mxu1 %v2403_v9  ;;  %v2419_v20 = vld [vmem:[#allocation2 + $0x44] ss:$16 sps:$4 sm:$0xff]   ;;  %v2421_v21 = vld [vmem:[#allocation2 + $0x4c] ss:$16 sps:$4 sm:$0xff]   ;;  %v2423_v22 = vld [vmem:[#allocation2 + $0x40] ss:$16 sps:$4 sm:$0xff]  }
  0x2e   :  { %v2424_v23 = vld [vmem:[#allocation2 + $0x48] ss:$16 sps:$4 sm:$0xff]   ;;  %v2425_v24 = vld [vmem:[#allocation2 + $0x24] ss:$16 sps:$4 sm:$0xff]   ;;  %v2427_v25 = vld [vmem:[#allocation2 + $0x2c] ss:$16 sps:$4 sm:$0xff]  }
  0x2f   :  { %v2429_v26 = vld [vmem:[#allocation2 + $0x20] ss:$16 sps:$4 sm:$0xff]   ;;  %v2430_v27 = vld [vmem:[#allocation2 + $0x28] ss:$16 sps:$4 sm:$0xff]   ;;  %v2431_v28 = vld [vmem:[#allocation2 + $0x4] ss:$16 sps:$4 sm:$0xff]  }
  0x30   :  { %492 = vmatpush1.bf16.msra.mxu0 %v2405_v10  ;;  %535 = vmatpush1.bf16.msra.mxu1 %v2406_v11  ;;  %v2433_v29 = vld [vmem:[#allocation2 + $0xc] ss:$16 sps:$4 sm:$0xff]   ;;  %v2435_v30 = vld [vmem:[#allocation2] ss:$16 sps:$4 sm:$0xff]   ;;  %v2436_v31 = vld [vmem:[#allocation2 + $0x8] ss:$16 sps:$4 sm:$0xff]  }
  0x31   :  { %493 = vmatprep.subr.bf16.mxu0 %v2407_v12  ;;  %536 = vmatprep.subr.bf16.mxu1 %v2409_v13  ;;  %v2437_v32 = vld [vmem:[#allocation2 + $0x1e4] ss:$16 sps:$4 sm:$0xff]   ;;  %v2439_v33 = vld [vmem:[#allocation2 + $0x1ec] ss:$16 sps:$4 sm:$0xff]   ;;  %v2441_v34 = vld [vmem:[#allocation2 + $0x1e0] ss:$16 sps:$4 sm:$0xff]  }
  0x32   :  { %v2442_v35 = vld [vmem:[#allocation2 + $0x1e8] ss:$16 sps:$4 sm:$0xff]   ;;  %v2443_v36 = vld [vmem:[#allocation2 + $0x1c4] ss:$16 sps:$4 sm:$0xff]   ;;  %v2445_v37 = vld [vmem:[#allocation2 + $0x1cc] ss:$16 sps:$4 sm:$0xff]  }
  0x33   :  { %v2447_v38 = vld [vmem:[#allocation2 + $0x1c0] ss:$16 sps:$4 sm:$0xff]   ;;  %v2448_v39 = vld [vmem:[#allocation2 + $0x1c8] ss:$16 sps:$4 sm:$0xff]   ;;  %v2449_v40 = vld [vmem:[#allocation2 + $0x1a4] ss:$16 sps:$4 sm:$0xff]  }
  0x34   :  { %494 = vmatpush1.bf16.msra.mxu0 %v2411_v14  ;;  %537 = vmatpush1.bf16.msra.mxu1 %v2412_v15  ;;  %v2451_v41 = vld [vmem:[#allocation2 + $0x1ac] ss:$16 sps:$4 sm:$0xff]   ;;  %v2453_v42 = vld [vmem:[#allocation2 + $0x1a0] ss:$16 sps:$4 sm:$0xff]   ;;  %v2454_v43 = vld [vmem:[#allocation2 + $0x1a8] ss:$16 sps:$4 sm:$0xff]  }
  0x35   :  { %495 = vmatprep.subr.bf16.mxu0 %v2413_v16  ;;  %538 = vmatprep.subr.bf16.mxu1 %v2415_v17  ;;  %v2455_v44 = vld [vmem:[#allocation2 + $0x184] ss:$16 sps:$4 sm:$0xff]   ;;  %v2457_v45 = vld [vmem:[#allocation2 + $0x18c] ss:$16 sps:$4 sm:$0xff]   ;;  %v2459_v46 = vld [vmem:[#allocation2 + $0x180] ss:$16 sps:$4 sm:$0xff]  }
  0x36   :  { %v2460_v47 = vld [vmem:[#allocation2 + $0x188] ss:$16 sps:$4 sm:$0xff]   ;;  %v2487_v48 = vld [vmem:[%s3439_s0 + $0x4] ss:$8 sps:$4 sm:$0xff]   ;;  %v2465_v51 = vld [vmem:[#allocation2 + $0x160] ss:$16 sps:$4 sm:$0xff]  }
  0x37   :  { %v2461_v49 = vld [vmem:[#allocation2 + $0x164] ss:$16 sps:$4 sm:$0xff]   ;;  %v2463_v50 = vld [vmem:[#allocation2 + $0x16c] ss:$16 sps:$4 sm:$0xff]   ;;  %519 = vmatprep.mubr.bf16.mxu0 %v2487_v48  ;;  %562 = vmatprep.mubr.bf16.mxu1 %v2487_v48  ;;  %v2466_v52 = vld [vmem:[#allocation2 + $0x168] ss:$16 sps:$4 sm:$0xff]  }
  0x38   :  { %496 = vmatpush1.bf16.msra.mxu0 %v2417_v18  ;;  %539 = vmatpush1.bf16.msra.mxu1 %v2418_v19  ;;  %v2467_v53 = vld [vmem:[#allocation2 + $0x144] ss:$16 sps:$4 sm:$0xff]   ;;  %v2469_v54 = vld [vmem:[#allocation2 + $0x14c] ss:$16 sps:$4 sm:$0xff]   ;;  %v2471_v55 = vld [vmem:[#allocation2 + $0x140] ss:$16 sps:$4 sm:$0xff]  }
  0x39   :  { %497 = vmatprep.subr.bf16.mxu0 %v2419_v20  ;;  %540 = vmatprep.subr.bf16.mxu1 %v2421_v21  ;;  %v2472_v56 = vld [vmem:[#allocation2 + $0x148] ss:$16 sps:$4 sm:$0xff]   ;;  %v2473_v57 = vld [vmem:[#allocation2 + $0x124] ss:$16 sps:$4 sm:$0xff]   ;;  %v2475_v58 = vld [vmem:[#allocation2 + $0x12c] ss:$16 sps:$4 sm:$0xff]  }
  0x3a   :  { %v2477_v59 = vld [vmem:[#allocation2 + $0x120] ss:$16 sps:$4 sm:$0xff]   ;;  %v2478_v60 = vld [vmem:[#allocation2 + $0x128] ss:$16 sps:$4 sm:$0xff]   ;;  %v2479_v61 = vld [vmem:[#allocation2 + $0x104] ss:$16 sps:$4 sm:$0xff]  }
  0x3b   :  { %v2481_v62 = vld [vmem:[#allocation2 + $0x10c] ss:$16 sps:$4 sm:$0xff]   ;;  %v2483_v63 = vld [vmem:[#allocation2 + $0x100] ss:$16 sps:$4 sm:$0xff]   ;;  %v2484_v0 = vld [vmem:[#allocation2 + $0x108] ss:$16 sps:$4 sm:$0xff]  }
  0x3c   :  { %498 = vmatpush1.bf16.msra.mxu0 %v2423_v22  ;;  %541 = vmatpush1.bf16.msra.mxu1 %v2424_v23  ;;  %v2860_v1 = vld [vmem:[#allocation5 + $0xe4] ss:$16 sps:$4 sm:$0xff]   ;;  %v2485_v3 = vld [vmem:[%s3439_s0] ss:$8 sps:$4 sm:$0xff]   ;;  %s2805_s24 = smov [#allocation8]  }
  0x3d   :  { %499 = vmatprep.subr.bf16.mxu0 %v2425_v24  ;;  %542 = vmatprep.subr.bf16.mxu1 %v2427_v25  ;;  %v2862_v2 = vld [vmem:[#allocation5 + $0x2e4] ss:$16 sps:$4 sm:$0xff]   ;;  %v2867_v4 = vld [vmem:[#allocation5 + $0xe0] ss:$16 sps:$4 sm:$0xff]   ;;  %s2095_s25 = sshll.u32 %s2805_s24, 4  ;;  %s2096_s25 = int_to_ptr.vmem [resolvable:$true] %s2095_s25 }
  0x3e   :  { %v2869_v5 = vld [vmem:[#allocation5 + $0x2e0] ss:$16 sps:$4 sm:$0xff]   ;;  %v2871_v6 = vld [vmem:[#allocation5 + $0xc4] ss:$16 sps:$4 sm:$0xff]   ;;  %s2772_s26 = scalar_lea.vmem %s2096_s25, 256  ;;  %p2777_p2 = scmp.lt.s32.totalorder %s2096_s25, %s2096_s25 }
  0x3f   :  { %v2875_v7 = vld [vmem:[#allocation5 + $0x2c4] ss:$16 sps:$4 sm:$0xff]   ;;  %v2877_v8 = vld [vmem:[#allocation5 + $0xc0] ss:$16 sps:$4 sm:$0xff]   ;;  %p2773_p1 = scmp.ne.s32.totalorder %s2096_s25, %s2772_s26  ;;  %p2778_p3 = scmp.lt.s32.totalorder %s2772_s26, %s2772_s26 }
  0x40   :  { %500 = vmatpush1.bf16.msra.mxu0 %v2429_v26  ;;  %543 = vmatpush1.bf16.msra.mxu1 %v2430_v27  ;;  %v2879_v9 = vld [vmem:[#allocation5 + $0x2c0] ss:$16 sps:$4 sm:$0xff]   ;;  %v2883_v10 = vld [vmem:[#allocation5 + $0xa4] ss:$16 sps:$4 sm:$0xff]  }
  0x41   :  { %501 = vmatprep.subr.bf16.mxu0 %v2431_v28  ;;  %544 = vmatprep.subr.bf16.mxu1 %v2433_v29  ;;  %v2887_v11 = vld [vmem:[#allocation5 + $0x2a4] ss:$16 sps:$4 sm:$0xff]   ;;  %v2889_v12 = vld [vmem:[#allocation5 + $0xa0] ss:$16 sps:$4 sm:$0xff]   ;;  %p2779_p4 = por %p2778_p3, %p2777_p2 }
  0x42   :  { %v2891_v13 = vld [vmem:[#allocation5 + $0x2a0] ss:$16 sps:$4 sm:$0xff]   ;;  %v2895_v14 = vld [vmem:[#allocation5 + $0x84] ss:$16 sps:$4 sm:$0xff]  }
  0x43   :  { %v2899_v15 = vld [vmem:[#allocation5 + $0x284] ss:$16 sps:$4 sm:$0xff]   ;;  %v2901_v16 = vld [vmem:[#allocation5 + $0x80] ss:$16 sps:$4 sm:$0xff]   ;;  %p2780_p5 = pnand %p2779_p4, %p2773_p1 }
  0x44   :  { %502 = vmatpush1.bf16.msra.mxu0 %v2435_v30  ;;  %545 = vmatpush1.bf16.msra.mxu1 %v2436_v31  ;;  %v2903_v17 = vld [vmem:[#allocation5 + $0x280] ss:$16 sps:$4 sm:$0xff]   ;;  %v2907_v18 = vld [vmem:[#allocation5 + $0x64] ss:$16 sps:$4 sm:$0xff]  }
  0x45   :  { %503 = vmatprep.subr.bf16.mxu0 %v2437_v32  ;;  %546 = vmatprep.subr.bf16.mxu1 %v2439_v33  ;;  %v2911_v19 = vld [vmem:[#allocation5 + $0x264] ss:$16 sps:$4 sm:$0xff]   ;;  %v2913_v20 = vld [vmem:[#allocation5 + $0x60] ss:$16 sps:$4 sm:$0xff]  }
  0x46   :  { %v2915_v21 = vld [vmem:[#allocation5 + $0x260] ss:$16 sps:$4 sm:$0xff]   ;;  %v2917_v22 = vld [vmem:[#allocation5 + $0x44] ss:$16 sps:$4 sm:$0xff]  }
  0x47   :  { %v2919_v23 = vld [vmem:[#allocation5 + $0x244] ss:$16 sps:$4 sm:$0xff]   ;;  %v2925_v24 = vld [vmem:[#allocation5 + $0x40] ss:$16 sps:$4 sm:$0xff]  }
  0x48   :  { %504 = vmatpush2.bf16.msra.mxu0 %v2441_v34  ;;  %547 = vmatpush2.bf16.msra.mxu1 %v2442_v35  ;;  %v2927_v25 = vld [vmem:[#allocation5 + $0x240] ss:$16 sps:$4 sm:$0xff]   ;;  %v2929_v26 = vld [vmem:[#allocation5 + $0x24] ss:$16 sps:$4 sm:$0xff]  }
  0x49   :  { %505 = vmatprep.subr.bf16.mxu0 %v2443_v36  ;;  %548 = vmatprep.subr.bf16.mxu1 %v2445_v37  ;;  %v2931_v27 = vld [vmem:[#allocation5 + $0x224] ss:$16 sps:$4 sm:$0xff]   ;;  %v2937_v28 = vld [vmem:[#allocation5 + $0x20] ss:$16 sps:$4 sm:$0xff]  }
  0x4a   :  { %v2939_v29 = vld [vmem:[#allocation5 + $0x220] ss:$16 sps:$4 sm:$0xff]   ;;  %v2941_v30 = vld [vmem:[#allocation5 + $0x4] ss:$16 sps:$4 sm:$0xff]  }
  0x4b   :  { %v2943_v31 = vld [vmem:[#allocation5 + $0x204] ss:$16 sps:$4 sm:$0xff]   ;;  %v2949_v32 = vld [vmem:[#allocation5] ss:$16 sps:$4 sm:$0xff]  }
  0x4c   :  { %506 = vmatpush2.bf16.msra.mxu0 %v2447_v38  ;;  %549 = vmatpush2.bf16.msra.mxu1 %v2448_v39  ;;  %v2951_v33 = vld [vmem:[#allocation5 + $0x200] ss:$16 sps:$4 sm:$0xff]   ;;  %v2953_v34 = vld [vmem:[#allocation5 + $0x1e4] ss:$16 sps:$4 sm:$0xff]  }
  0x4d   :  { %507 = vmatprep.subr.bf16.mxu0 %v2449_v40  ;;  %550 = vmatprep.subr.bf16.mxu1 %v2451_v41  ;;  %v2955_v35 = vld [vmem:[#allocation5 + $0x3e4] ss:$16 sps:$4 sm:$0xff]   ;;  %v2961_v36 = vld [vmem:[#allocation5 + $0x1e0] ss:$16 sps:$4 sm:$0xff]  }
  0x4e   :  { %3521 = vst [vmem:[#allocation12_spill] sm:$0xff] %v2961_v36  ;;  %v2963_v37 = vld [vmem:[#allocation5 + $0x3e0] ss:$16 sps:$4 sm:$0xff]   ;;  %v2965_v38 = vld [vmem:[#allocation5 + $0x1c4] ss:$16 sps:$4 sm:$0xff]  }
  0x4f   :  { %3522 = vst [vmem:[#allocation13_spill] sm:$0xff] %v2963_v37  ;;  %3523 = vst [vmem:[#allocation14_spill] sm:$0xff] %v2965_v38  ;;  %v2967_v39 = vld [vmem:[#allocation5 + $0x3c4] ss:$16 sps:$4 sm:$0xff]   ;;  %v2973_v40 = vld [vmem:[#allocation5 + $0x1c0] ss:$16 sps:$4 sm:$0xff]  }
  0x50   :  { %508 = vmatpush2.bf16.msra.mxu0 %v2453_v42  ;;  %551 = vmatpush2.bf16.msra.mxu1 %v2454_v43  ;;  %3524 = vst [vmem:[#allocation15_spill] sm:$0xff] %v2967_v39  ;;  %3525 = vst [vmem:[#allocation16_spill] sm:$0xff] %v2973_v40  ;;  %v2975_v41 = vld [vmem:[#allocation5 + $0x3c0] ss:$16 sps:$4 sm:$0xff]   ;;  %v2977_v42 = vld [vmem:[#allocation5 + $0x1a4] ss:$16 sps:$4 sm:$0xff]  }
  0x51   :  { %509 = vmatprep.subr.bf16.mxu0 %v2455_v44  ;;  %552 = vmatprep.subr.bf16.mxu1 %v2457_v45  ;;  %3526 = vst [vmem:[#allocation17_spill] sm:$0xff] %v2975_v41  ;;  %3527 = vst [vmem:[#allocation18_spill] sm:$0xff] %v2977_v42  ;;  %v2979_v43 = vld [vmem:[#allocation5 + $0x3a4] ss:$16 sps:$4 sm:$0xff]   ;;  %v2985_v44 = vld [vmem:[#allocation5 + $0x1a0] ss:$16 sps:$4 sm:$0xff]  }
  0x52   :  { %3528 = vst [vmem:[#allocation19_spill] sm:$0xff] %v2979_v43  ;;  %3529 = vst [vmem:[#allocation20_spill] sm:$0xff] %v2985_v44  ;;  %v2987_v45 = vld [vmem:[#allocation5 + $0x3a0] ss:$16 sps:$4 sm:$0xff]  }
  0x53   :  { %3530 = vst [vmem:[#allocation21_spill] sm:$0xff] %v2987_v45  ;;  %v2997_v48 = vld [vmem:[#allocation5 + $0x180] ss:$16 sps:$4 sm:$0xff]  }
  0x54   :  { %510 = vmatpush2.bf16.msra.mxu0 %v2459_v46  ;;  %553 = vmatpush2.bf16.msra.mxu1 %v2460_v47  ;;  %v2989_v46 = vld [vmem:[#allocation5 + $0x184] ss:$16 sps:$4 sm:$0xff]   ;;  %3533 = vst [vmem:[#allocation24_spill] sm:$0xff] %v2997_v48 }
  0x55   :  { %511 = vmatprep.subr.bf16.mxu0 %v2461_v49  ;;  %554 = vmatprep.subr.bf16.mxu1 %v2463_v50  ;;  %3531 = vst [vmem:[#allocation22_spill] sm:$0xff] %v2989_v46  ;;  %v2991_v47 = vld [vmem:[#allocation5 + $0x384] ss:$16 sps:$4 sm:$0xff]   ;;  %v2999_v49 = vld [vmem:[#allocation5 + $0x380] ss:$16 sps:$4 sm:$0xff]  }
  0x56   :  { %3532 = vst [vmem:[#allocation23_spill] sm:$0xff] %v2991_v47  ;;  %3534 = vst [vmem:[#allocation25_spill] sm:$0xff] %v2999_v49  ;;  %v3001_v50 = vld [vmem:[#allocation5 + $0x164] ss:$16 sps:$4 sm:$0xff]  }
  0x57   :  { %3535 = vst [vmem:[#allocation26_spill] sm:$0xff] %v3001_v50 }
  0x58   :  { %512 = vmatpush2.bf16.msra.mxu0 %v2465_v51  ;;  %555 = vmatpush2.bf16.msra.mxu1 %v2466_v52  ;;  %v3003_v51 = vld [vmem:[#allocation5 + $0x364] ss:$16 sps:$4 sm:$0xff]   ;;  %v3009_v52 = vld [vmem:[#allocation5 + $0x160] ss:$16 sps:$4 sm:$0xff]  }
  0x59   :  { %513 = vmatprep.subr.bf16.mxu0 %v2467_v53  ;;  %556 = vmatprep.subr.bf16.mxu1 %v2469_v54  ;;  %3536 = vst [vmem:[#allocation27_spill] sm:$0xff] %v3003_v51  ;;  %3537 = vst [vmem:[#allocation28_spill] sm:$0xff] %v3009_v52  ;;  %v3011_v53 = vld [vmem:[#allocation5 + $0x360] ss:$16 sps:$4 sm:$0xff]   ;;  %v137_v54 = vlaneseq }
  0x5a   :  { %3538 = vst [vmem:[#allocation29_spill] sm:$0xff] %v3011_v53 }
  0x5c   :  { %514 = vmatpush2.bf16.msra.mxu0 %v2471_v55  ;;  %557 = vmatpush2.bf16.msra.mxu1 %v2472_v56  ;;  %v3019_v55 = vld [vmem:[#allocation5 + $0x144] ss:$16 sps:$4 sm:$0xff]  }
  0x5d   :  { %515 = vmatprep.subr.bf16.mxu0 %v2473_v57  ;;  %558 = vmatprep.subr.bf16.mxu1 %v2475_v58  ;;  %3539 = vst [vmem:[#allocation30_spill] sm:$0xff] %v3019_v55  ;;  %v3021_v56 = vld [vmem:[#allocation5 + $0x344] ss:$16 sps:$4 sm:$0xff]   ;;  %v3023_v57 = vshrl.u32 %v137_v54, 7  ;;  %v3025_v58 = vld [vmem:[#allocation5 + $0x140] ss:$16 sps:$4 sm:$0xff]  }
  0x5e   :  { %3540 = vst [vmem:[#allocation31_spill] sm:$0xff] %v3021_v56  ;;  %3542 = vst [vmem:[#allocation33_spill] sm:$0xff] %v3025_v58  ;;  %v3047_v54 = vld [vmem:[#allocation5 + $0x120] ss:$16 sps:$4 sm:$0xff]  }
  0x5f   :  { %3541 = vst [vmem:[#allocation32_spill] sm:$0xff] %v3023_v57  ;;  %3548 = vst [vmem:[#allocation39_spill] sm:$0xff] %v3047_v54 }
  0x60   :  { %516 = vmatpush2.bf16.msra.mxu0 %v2477_v59  ;;  %559 = vmatpush2.bf16.msra.mxu1 %v2478_v60  ;;  %v3027_v59 = vld [vmem:[#allocation5 + $0x340] ss:$16 sps:$4 sm:$0xff]   ;;  %v147_v60 = vsub.s32 2, %v3023_v57 }
  0x61   :  { %517 = vmatprep.subr.bf16.mxu0 %v2479_v61  ;;  %560 = vmatprep.subr.bf16.mxu1 %v2481_v62  ;;  %3543 = vst [vmem:[#allocation34_spill] sm:$0xff] %v3027_v59  ;;  %v151_v61 = vsub.s32 3, %v3023_v57  ;;  %v3038_v62 = vld [vmem:[%s3443_s4] sm:$0xf] }
  0x62   :  { %3544 = vst [vmem:[#allocation35_spill] sm:$0xff] %v3038_v62 }
  0x64   :  { %518 = vmatpush2.bf16.msra.mxu0 %v2483_v63  ;;  %561 = vmatpush2.bf16.msra.mxu1 %v2484_v0  ;;  %v3040_v63 = vld [vmem:[#allocation5 + $0x124] ss:$16 sps:$4 sm:$0xff]  }
  0x65   :  { %1375 = vmatprep.subr.bf16.mxu0 %v2860_v1  ;;  %1418 = vmatprep.subr.bf16.mxu1 %v2862_v2  ;;  %3545 = vst [vmem:[#allocation36_spill] sm:$0xff] %v3040_v63  ;;  %v3042_v0 = vld [vmem:[#allocation5 + $0x324] ss:$16 sps:$4 sm:$0xff]  }
  0x66   :  { %3546 = vst [vmem:[#allocation37_spill] sm:$0xff] %v3042_v0 }
  0x67   :  { %520 = vmatmul.mubr.bf16.vlgmr.msra.gmra.mxu0 %v2485_v3  ;;  %563 = vmatmul.mubr.bf16.vlgmr.msra.gmra.mxu1 %v2485_v3  ;;  %v3045_v3 = vrot.slane %v3038_v62, %v147_v60 }
  0x68   :  { %1376 = vmatpush1.bf16.msra.mxu0 %v2867_v4  ;;  %1419 = vmatpush1.bf16.msra.mxu1 %v2869_v5 }
  0x69   :  { %1377 = vmatprep.subr.bf16.mxu0 %v2871_v6  ;;  %1420 = vmatprep.subr.bf16.mxu1 %v2875_v7  ;;  %3547 = vst [vmem:[#allocation38_spill] sm:$0xff] %v3045_v3  ;;  %v3062_v3 = vld [vmem:[#allocation5 + $0x100] ss:$16 sps:$4 sm:$0xff]  }
  0x6a   :  { %3553 = vst [vmem:[#allocation44_spill] sm:$0xff] %v3062_v3 }
  0x6c   :  { %1378 = vmatpush1.bf16.msra.mxu0 %v2877_v8  ;;  %1421 = vmatpush1.bf16.msra.mxu1 %v2879_v9 }
  0x6d   :  { %1379 = vmatprep.subr.bf16.mxu0 %v2883_v10  ;;  %1422 = vmatprep.subr.bf16.mxu1 %v2887_v11 }
  0x70   :  { %1380 = vmatpush1.bf16.msra.mxu0 %v2889_v12  ;;  %1423 = vmatpush1.bf16.msra.mxu1 %v2891_v13 }
  0x71   :  { %1381 = vmatprep.subr.bf16.mxu0 %v2895_v14  ;;  %1424 = vmatprep.subr.bf16.mxu1 %v2899_v15 }
  0x74   :  { %1382 = vmatpush1.bf16.msra.mxu0 %v2901_v16  ;;  %1425 = vmatpush1.bf16.msra.mxu1 %v2903_v17 }
  0x75   :  { %1383 = vmatprep.subr.bf16.mxu0 %v2907_v18  ;;  %1426 = vmatprep.subr.bf16.mxu1 %v2911_v19 }
  0x78   :  { %1384 = vmatpush1.bf16.msra.mxu0 %v2913_v20  ;;  %1427 = vmatpush1.bf16.msra.mxu1 %v2915_v21 }
  0x79   :  { %1385 = vmatprep.subr.bf16.mxu0 %v2917_v22  ;;  %1428 = vmatprep.subr.bf16.mxu1 %v2919_v23 }
  0x7c   :  { %1386 = vmatpush1.bf16.msra.mxu0 %v2925_v24  ;;  %1429 = vmatpush1.bf16.msra.mxu1 %v2927_v25 }
  0x7d   :  { %1387 = vmatprep.subr.bf16.mxu0 %v2929_v26  ;;  %1430 = vmatprep.subr.bf16.mxu1 %v2931_v27 }
  0x80   :  { %1388 = vmatpush1.bf16.msra.mxu0 %v2937_v28  ;;  %1431 = vmatpush1.bf16.msra.mxu1 %v2939_v29 }
  0x81   :  { %1389 = vmatprep.subr.bf16.mxu0 %v2941_v30  ;;  %1432 = vmatprep.subr.bf16.mxu1 %v2943_v31 }
  0x84   :  { %1390 = vmatpush1.bf16.msra.mxu0 %v2949_v32  ;;  %1433 = vmatpush1.bf16.msra.mxu1 %v2951_v33 }
  0x85   :  { %1391 = vmatprep.subr.bf16.mxu0 %v2953_v34  ;;  %1434 = vmatprep.subr.bf16.mxu1 %v2955_v35 }
  0x88   :  { %1392 = vmatpush2.bf16.msra.mxu0 %v2961_v36  ;;  %1435 = vmatpush2.bf16.msra.mxu1 %v2963_v37 }
  0x89   :  { %1393 = vmatprep.subr.bf16.mxu0 %v2965_v38  ;;  %1436 = vmatprep.subr.bf16.mxu1 %v2967_v39 }
  0x8c   :  { %1394 = vmatpush2.bf16.msra.mxu0 %v2973_v40  ;;  %1437 = vmatpush2.bf16.msra.mxu1 %v2975_v41 }
  0x8d   :  { %1395 = vmatprep.subr.bf16.mxu0 %v2977_v42  ;;  %1438 = vmatprep.subr.bf16.mxu1 %v2979_v43 }
  0x90   :  { %1396 = vmatpush2.bf16.msra.mxu0 %v2985_v44  ;;  %1439 = vmatpush2.bf16.msra.mxu1 %v2987_v45 }
  0x91   :  { %1397 = vmatprep.subr.bf16.mxu0 %v2989_v46  ;;  %1440 = vmatprep.subr.bf16.mxu1 %v2991_v47 }
  0x94   :  { %1398 = vmatpush2.bf16.msra.mxu0 %v2997_v48  ;;  %1441 = vmatpush2.bf16.msra.mxu1 %v2999_v49 }
  0x95   :  { %1399 = vmatprep.subr.bf16.mxu0 %v3001_v50  ;;  %1442 = vmatprep.subr.bf16.mxu1 %v3003_v51 }
  0x98   :  { %1400 = vmatpush2.bf16.msra.mxu0 %v3009_v52  ;;  %1443 = vmatpush2.bf16.msra.mxu1 %v3011_v53  ;;  %v3064_v53 = vld [vmem:[#allocation5 + $0x300] ss:$16 sps:$4 sm:$0xff]  }
  0x99   :  { %1401 = vmatprep.subr.bf16.mxu0 %v3019_v55  ;;  %1444 = vmatprep.subr.bf16.mxu1 %v3021_v56  ;;  %v3049_v56 = vld [vmem:[#allocation5 + $0x320] ss:$16 sps:$4 sm:$0xff]   ;;  %v3060_v55 = vld [vmem:[#allocation5 + $0x304] ss:$16 sps:$4 sm:$0xff]   ;;  %3554 = vst [vmem:[#allocation45_spill] sm:$0xff] %v3064_v53 }
  0x9a   :  { %3549 = vst [vmem:[#allocation40_spill] sm:$0xff] %v3049_v56  ;;  %3552 = vst [vmem:[#allocation43_spill] sm:$0xff] %v3060_v55 }
  0x9c   :  { %1402 = vmatpush2.bf16.msra.mxu0 %v3025_v58  ;;  %1445 = vmatpush2.bf16.msra.mxu1 %v3027_v59  ;;  %v3052_v58 = vrot.slane %v3038_v62, %v151_v61  ;;  %v3058_v59 = vld [vmem:[#allocation5 + $0x104] ss:$16 sps:$4 sm:$0xff]   ;;  %v3072_v62 = vld [vmem:[#allocation5 + $0x2ec] ss:$16 sps:$4 sm:$0xff]  }
  0x9d   :  { %1403 = vmatprep.subr.bf16.mxu0 %v3040_v63  ;;  %1446 = vmatprep.subr.bf16.mxu1 %v3042_v0  ;;  %3551 = vst [vmem:[#allocation42_spill] sm:$0xff] %v3058_v59  ;;  %3556 = vst [vmem:[#allocation47_spill] sm:$0xff] %v3072_v62 }
  0x9e   :  { %3550 = vst [vmem:[#allocation41_spill] sm:$0xff] %v3052_v58  ;;  %v3070_v58 = vld [vmem:[#allocation5 + $0xec] ss:$16 sps:$4 sm:$0xff]  }
  0x9f   :  { %3555 = vst [vmem:[#allocation46_spill] sm:$0xff] %v3070_v58 }
  0xa0   :  { %1404 = vmatpush2.bf16.msra.mxu0 %v3047_v54  ;;  %1447 = vmatpush2.bf16.msra.mxu1 %v3049_v56  ;;  %v3479_v56 = vsub.s32 1, %v3023_v57  ;;  %v3483_v54 = vsub.s32 0, %v3023_v57 }
  0xa1   :  { %1405 = vmatprep.subr.bf16.mxu0 %v3058_v59  ;;  %1448 = vmatprep.subr.bf16.mxu1 %v3060_v55  ;;  %v135_v55 = vld [vmem:[%s3441_s2] sm:$0xf] }
  0xa2   :  { %v152_v0 = vrot.slane %v135_v55, %v151_v61  ;;  %v140_v63 = vrot.slane %v135_v55, %v3483_v54 }
  0xa4   :  { %1406 = vmatpush2.bf16.msra.mxu0 %v3062_v3  ;;  %1449 = vmatpush2.bf16.msra.mxu1 %v3064_v53  ;;  %v144_v53 = vrot.slane %v135_v55, %v3479_v56 }
  0xa5   :  { %1461 = vmatprep.subr.bf16.mxu0 %v3070_v58  ;;  %1504 = vmatprep.subr.bf16.mxu1 %v3072_v62  ;;  %v148_v58 = vrot.slane %v135_v55, %v147_v60 }
 0x127   :  { %v521_v59 = vpop.f32.mrf.mxu0  ;;  %v564_v3 = vpop.f32.mrf.mxu1 }
 0x128   :  { %v522_v45 = vadd.f32 %v521_v59, %v140_v63  ;;  %v565_v44 = vadd.f32 %v564_v3, %v148_v58  ;;  %v3145_v59 = vld [vmem:[#allocation5 + $0x24c] ss:$16 sps:$4 sm:$0xff]  }
 0x129   :  { %v523_v52 = vpop.f32.mrf.mxu0  ;;  %v566_v62 = vpop.f32.mrf.mxu1  ;;  %3566 = vst [vmem:[#allocation57_spill] sm:$0xff] %v3145_v59  ;;  %v3157_v3 = vld [vmem:[#allocation5 + $0x22c] ss:$16 sps:$4 sm:$0xff]  }
 0x12a   :  { %v524_v49 = vadd.f32 %v523_v52, %v144_v53  ;;  %v567_v48 = vadd.f32 %v566_v62, %v152_v0  ;;  %v573_v60 = vmax.f32 %v522_v45, 0.0  ;;  %v575_v38 = vmax.f32 %v565_v44, 0.0  ;;  %v3085_v52 = vld [vmem:[#allocation5 + $0xe8] ss:$16 sps:$4 sm:$0xff]   ;;  %3568 = vst [vmem:[#allocation59_spill] sm:$0xff] %v3157_v3 }
 0x12b   :  { %v525_v51 = vpop.f32.mrf.mxu0  ;;  %v568_v50 = vpop.f32.mrf.mxu1  ;;  %v3113_v44 = vld [vmem:[#allocation5 + $0xa8] ss:$16 sps:$4 sm:$0xff]  }
 0x12c   :  { %v526_v47 = vadd.f32 %v525_v51, %v140_v63  ;;  %v569_v46 = vadd.f32 %v568_v50, %v148_v58  ;;  %v574_v39 = vmax.f32 %v524_v49, 0.0  ;;  %v576_v57 = vmax.f32 %v567_v48, 0.0  ;;  %v3087_v51 = vld [vmem:[#allocation5 + $0x2e8] ss:$16 sps:$4 sm:$0xff]   ;;  %v3131_v48 = vld [vmem:[#allocation5 + $0x6c] ss:$16 sps:$4 sm:$0xff]  }
 0x12d   :  { %v527_v43 = vpop.f32.mrf.mxu0  ;;  %v570_v42 = vpop.f32.mrf.mxu1  ;;  %3557 = vst [vmem:[#allocation48_spill] sm:$0xff] %v3087_v51  ;;  %v3115_v45 = vld [vmem:[#allocation5 + $0x2a8] ss:$16 sps:$4 sm:$0xff]   ;;  %v3133_v49 = vld [vmem:[#allocation5 + $0x26c] ss:$16 sps:$4 sm:$0xff]  }
 0x12e   :  { %v528_v41 = vadd.f32 %v527_v43, %v144_v53  ;;  %v571_v40 = vadd.f32 %v570_v42, %v152_v0  ;;  %v577_v56 = vmax.f32 %v526_v47, 0.0  ;;  %v579_v61 = vmax.f32 %v569_v46, 0.0  ;;  %v3093_v42 = vld [vmem:[#allocation5 + $0xcc] ss:$16 sps:$4 sm:$0xff]   ;;  %3561 = vst [vmem:[#allocation52_spill] sm:$0xff] %v3115_v45  ;;  %3564 = vst [vmem:[#allocation55_spill] sm:$0xff] %v3133_v49 }
 0x12f   :  { %v3095_v43 = vld [vmem:[#allocation5 + $0x2cc] ss:$16 sps:$4 sm:$0xff]   ;;  %v3125_v46 = vld [vmem:[#allocation5 + $0x88] ss:$16 sps:$4 sm:$0xff]  }
 0x130   :  { %v578_v54 = vmax.f32 %v528_v41, 0.0  ;;  %v580_v55 = vmax.f32 %v571_v40, 0.0  ;;  %v3089_v50 = vpack.c.bf16 %v577_v56, %v573_v60  ;;  %v3091_v58 = vpack.c.bf16 %v579_v61, %v575_v38  ;;  %3558 = vst [vmem:[#allocation49_spill] sm:$0xff] %v3095_v43  ;;  %v3103_v40 = vld [vmem:[#allocation5 + $0x2c8] ss:$16 sps:$4 sm:$0xff]  }
 0x131   :  { %3559 = vst [vmem:[#allocation50_spill] sm:$0xff] %v3103_v40  ;;  %v3105_v38 = vld [vmem:[#allocation5 + $0xac] ss:$16 sps:$4 sm:$0xff]   ;;  %v3127_v47 = vld [vmem:[#allocation5 + $0x288] ss:$16 sps:$4 sm:$0xff]  }
 0x132   :  { %v582_v37 = vpack.c.bf16 %v578_v54, %v574_v39  ;;  %v584_v36 = vpack.c.bf16 %v580_v55, %v576_v57  ;;  %v3101_v39 = vld [vmem:[#allocation5 + $0xc8] ss:$16 sps:$4 sm:$0xff]   ;;  %v3107_v41 = vld [vmem:[#allocation5 + $0x2ac] ss:$16 sps:$4 sm:$0xff]   ;;  %3563 = vst [vmem:[#allocation54_spill] sm:$0xff] %v3127_v47 }
 0x133   :  { %3560 = vst [vmem:[#allocation51_spill] sm:$0xff] %v3107_v41  ;;  %v3137_v53 = vld [vmem:[#allocation5 + $0x68] ss:$16 sps:$4 sm:$0xff]   ;;  %v3143_v57 = vld [vmem:[#allocation5 + $0x4c] ss:$16 sps:$4 sm:$0xff]  }
 0x134   :  { %1407 = vmatprep.mubr.bf16.mxu0 %v582_v37  ;;  %1450 = vmatprep.mubr.bf16.mxu1 %v584_v36  ;;  %v3139_v56 = vld [vmem:[#allocation5 + $0x268] ss:$16 sps:$4 sm:$0xff]   ;;  %v3155_v0 = vld [vmem:[#allocation5 + $0x2c] ss:$16 sps:$4 sm:$0xff]  }
 0x135   :  { %1408 = vmatmul.mubr.bf16.vlgmr.msra.gmra.mxu0 %v3089_v50  ;;  %1451 = vmatmul.mubr.bf16.vlgmr.msra.gmra.mxu1 %v3091_v58  ;;  %3565 = vst [vmem:[#allocation56_spill] sm:$0xff] %v3139_v56  ;;  %v3149_v62 = vld [vmem:[#allocation5 + $0x48] ss:$16 sps:$4 sm:$0xff]   ;;  %v3167_v55 = vld [vmem:[#allocation5 + $0xc] ss:$16 sps:$4 sm:$0xff]  }
 0x136   :  { %1462 = vmatpush1.bf16.msra.mxu0 %v3085_v52  ;;  %1505 = vmatpush1.bf16.msra.mxu1 %v3087_v51  ;;  %v3151_v63 = vld [vmem:[#allocation5 + $0x248] ss:$16 sps:$4 sm:$0xff]   ;;  %v3169_v60 = vld [vmem:[#allocation5 + $0x20c] ss:$16 sps:$4 sm:$0xff]  }
 0x137   :  { %1493 = vmatprep.mubr.bf16.mxu0 %v582_v37  ;;  %1536 = vmatprep.mubr.bf16.mxu1 %v584_v36  ;;  %v3119_v36 = vld [vmem:[#allocation5 + $0x8c] ss:$16 sps:$4 sm:$0xff]   ;;  %3567 = vst [vmem:[#allocation58_spill] sm:$0xff] %v3151_v63  ;;  %v3161_v54 = vld [vmem:[#allocation5 + $0x28] ss:$16 sps:$4 sm:$0xff]   ;;  %3570 = vst [vmem:[#allocation61_spill] sm:$0xff] %v3169_v60 }
 0x138   :  { %1463 = vmatprep.subr.bf16.mxu0 %v3093_v42  ;;  %1506 = vmatprep.subr.bf16.mxu1 %v3095_v43  ;;  %v3121_v37 = vld [vmem:[#allocation5 + $0x28c] ss:$16 sps:$4 sm:$0xff]   ;;  %v3163_v61 = vld [vmem:[#allocation5 + $0x228] ss:$16 sps:$4 sm:$0xff]  }
 0x139   :  { %3562 = vst [vmem:[#allocation53_spill] sm:$0xff] %v3121_v37  ;;  %3569 = vst [vmem:[#allocation60_spill] sm:$0xff] %v3163_v61  ;;  %v3217_v43 = vld [vmem:[#allocation5 + $0x38c] ss:$16 sps:$4 sm:$0xff]   ;;  %v3223_v51 = vld [vmem:[#allocation5 + $0x388] ss:$16 sps:$4 sm:$0xff]  }
 0x13a   :  { %1464 = vmatpush1.bf16.msra.mxu0 %v3101_v39  ;;  %1507 = vmatpush1.bf16.msra.mxu1 %v3103_v40  ;;  %v3211_v40 = vld [vmem:[#allocation5 + $0x3a8] ss:$16 sps:$4 sm:$0xff]   ;;  %3581 = vst [vmem:[#allocation72_spill] sm:$0xff] %v3217_v43  ;;  %3583 = vst [vmem:[#allocation74_spill] sm:$0xff] %v3223_v51 }
 0x13b   :  { %1465 = vmatprep.subr.bf16.mxu0 %v3105_v38  ;;  %1508 = vmatprep.subr.bf16.mxu1 %v3107_v41  ;;  %v3205_v41 = vld [vmem:[#allocation5 + $0x3ac] ss:$16 sps:$4 sm:$0xff]   ;;  %3579 = vst [vmem:[#allocation70_spill] sm:$0xff] %v3211_v40 }
 0x13c   :  { %3577 = vst [vmem:[#allocation68_spill] sm:$0xff] %v3205_v41 }
 0x13e   :  { %1466 = vmatpush1.bf16.msra.mxu0 %v3113_v44  ;;  %1509 = vmatpush1.bf16.msra.mxu1 %v3115_v45  ;;  %v3199_v45 = vld [vmem:[#allocation5 + $0x3c8] ss:$16 sps:$4 sm:$0xff]  }
 0x13f   :  { %1467 = vmatprep.subr.bf16.mxu0 %v3119_v36  ;;  %1510 = vmatprep.subr.bf16.mxu1 %v3121_v37  ;;  %v3193_v37 = vld [vmem:[#allocation5 + $0x3cc] ss:$16 sps:$4 sm:$0xff]   ;;  %3575 = vst [vmem:[#allocation66_spill] sm:$0xff] %v3199_v45 }
 0x140   :  { %3574 = vst [vmem:[#allocation65_spill] sm:$0xff] %v3193_v37 }
 0x142   :  { %1468 = vmatpush1.bf16.msra.mxu0 %v3125_v46  ;;  %1511 = vmatpush1.bf16.msra.mxu1 %v3127_v47  ;;  %v3187_v47 = vld [vmem:[#allocation5 + $0x3e8] ss:$16 sps:$4 sm:$0xff]  }
 0x143   :  { %1469 = vmatprep.subr.bf16.mxu0 %v3131_v48  ;;  %1512 = vmatprep.subr.bf16.mxu1 %v3133_v49  ;;  %v3181_v49 = vld [vmem:[#allocation5 + $0x3ec] ss:$16 sps:$4 sm:$0xff]   ;;  %3573 = vst [vmem:[#allocation64_spill] sm:$0xff] %v3187_v47 }
 0x144   :  { %3572 = vst [vmem:[#allocation63_spill] sm:$0xff] %v3181_v49 }
 0x146   :  { %1470 = vmatpush1.bf16.msra.mxu0 %v3137_v53  ;;  %1513 = vmatpush1.bf16.msra.mxu1 %v3139_v56  ;;  %v3175_v56 = vld [vmem:[#allocation5 + $0x208] ss:$16 sps:$4 sm:$0xff]  }
 0x147   :  { %1471 = vmatprep.subr.bf16.mxu0 %v3143_v57  ;;  %1514 = vmatprep.subr.bf16.mxu1 %v3145_v59  ;;  %v3173_v59 = vld [vmem:[#allocation5 + $0x8] ss:$16 sps:$4 sm:$0xff]   ;;  %3571 = vst [vmem:[#allocation62_spill] sm:$0xff] %v3175_v56 }
 0x14a   :  { %1472 = vmatpush1.bf16.msra.mxu0 %v3149_v62  ;;  %1515 = vmatpush1.bf16.msra.mxu1 %v3151_v63  ;;  %v3179_v63 = vld [vmem:[#allocation5 + $0x1ec] ss:$16 sps:$4 sm:$0xff]  }
 0x14b   :  { %1473 = vmatprep.subr.bf16.mxu0 %v3155_v0  ;;  %1516 = vmatprep.subr.bf16.mxu1 %v3157_v3  ;;  %v3185_v3 = vld [vmem:[#allocation5 + $0x1e8] ss:$16 sps:$4 sm:$0xff]  }
 0x14e   :  { %1474 = vmatpush1.bf16.msra.mxu0 %v3161_v54  ;;  %1517 = vmatpush1.bf16.msra.mxu1 %v3163_v61  ;;  %v3191_v61 = vld [vmem:[#allocation5 + $0x1cc] ss:$16 sps:$4 sm:$0xff]  }
 0x14f   :  { %1475 = vmatprep.subr.bf16.mxu0 %v3167_v55  ;;  %1518 = vmatprep.subr.bf16.mxu1 %v3169_v60  ;;  %v3197_v60 = vld [vmem:[#allocation5 + $0x1c8] ss:$16 sps:$4 sm:$0xff]  }
 0x152   :  { %1476 = vmatpush1.bf16.msra.mxu0 %v3173_v59  ;;  %1519 = vmatpush1.bf16.msra.mxu1 %v3175_v56  ;;  %v3203_v56 = vld [vmem:[#allocation5 + $0x1ac] ss:$16 sps:$4 sm:$0xff]  }
 0x153   :  { %1477 = vmatprep.subr.bf16.mxu0 %v3179_v63  ;;  %1520 = vmatprep.subr.bf16.mxu1 %v3181_v49  ;;  %3576 = vst [vmem:[#allocation67_spill] sm:$0xff] %v3203_v56  ;;  %v3209_v49 = vld [vmem:[#allocation5 + $0x1a8] ss:$16 sps:$4 sm:$0xff]  }
 0x154   :  { %3578 = vst [vmem:[#allocation69_spill] sm:$0xff] %v3209_v49 }
 0x156   :  { %1478 = vmatpush2.bf16.msra.mxu0 %v3185_v3  ;;  %1521 = vmatpush2.bf16.msra.mxu1 %v3187_v47  ;;  %v3215_v47 = vld [vmem:[#allocation5 + $0x18c] ss:$16 sps:$4 sm:$0xff]  }
 0x157   :  { %1479 = vmatprep.subr.bf16.mxu0 %v3191_v61  ;;  %1522 = vmatprep.subr.bf16.mxu1 %v3193_v37  ;;  %3580 = vst [vmem:[#allocation71_spill] sm:$0xff] %v3215_v47  ;;  %v3221_v37 = vld [vmem:[#allocation5 + $0x188] ss:$16 sps:$4 sm:$0xff]  }
 0x158   :  { %3582 = vst [vmem:[#allocation73_spill] sm:$0xff] %v3221_v37 }
 0x15a   :  { %1480 = vmatpush2.bf16.msra.mxu0 %v3197_v60  ;;  %1523 = vmatpush2.bf16.msra.mxu1 %v3199_v45  ;;  %v3227_v45 = vld [vmem:[#allocation5 + $0x16c] ss:$16 sps:$4 sm:$0xff]  }
 0x15b   :  { %1481 = vmatprep.subr.bf16.mxu0 %v3203_v56  ;;  %1524 = vmatprep.subr.bf16.mxu1 %v3205_v41  ;;  %3584 = vst [vmem:[#allocation75_spill] sm:$0xff] %v3227_v45  ;;  %v3229_v56 = vld [vmem:[#allocation5 + $0x36c] ss:$16 sps:$4 sm:$0xff]   ;;  %v3233_v41 = vld [vmem:[#allocation5 + $0x168] ss:$16 sps:$4 sm:$0xff]  }
 0x15c   :  { %3585 = vst [vmem:[#allocation76_spill] sm:$0xff] %v3229_v56  ;;  %3586 = vst [vmem:[#allocation77_spill] sm:$0xff] %v3233_v41 }
 0x15e   :  { %1482 = vmatpush2.bf16.msra.mxu0 %v3209_v49  ;;  %1525 = vmatpush2.bf16.msra.mxu1 %v3211_v40  ;;  %v3235_v49 = vld [vmem:[#allocation5 + $0x368] ss:$16 sps:$4 sm:$0xff]   ;;  %v3239_v40 = vld [vmem:[#allocation5 + $0x14c] ss:$16 sps:$4 sm:$0xff]  }
 0x15f   :  { %1483 = vmatprep.subr.bf16.mxu0 %v3215_v47  ;;  %1526 = vmatprep.subr.bf16.mxu1 %v3217_v43  ;;  %3587 = vst [vmem:[#allocation78_spill] sm:$0xff] %v3235_v49  ;;  %3588 = vst [vmem:[#allocation79_spill] sm:$0xff] %v3239_v40  ;;  %v3241_v47 = vld [vmem:[#allocation5 + $0x34c] ss:$16 sps:$4 sm:$0xff]   ;;  %v3245_v43 = vld [vmem:[#allocation5 + $0x148] ss:$16 sps:$4 sm:$0xff]  }
 0x160   :  { %3589 = vst [vmem:[#allocation80_spill] sm:$0xff] %v3241_v47  ;;  %3590 = vst [vmem:[#allocation81_spill] sm:$0xff] %v3245_v43 }
 0x162   :  { %1484 = vmatpush2.bf16.msra.mxu0 %v3221_v37  ;;  %1527 = vmatpush2.bf16.msra.mxu1 %v3223_v51  ;;  %v3247_v37 = vld [vmem:[#allocation5 + $0x348] ss:$16 sps:$4 sm:$0xff]   ;;  %v3251_v51 = vld [vmem:[#allocation5 + $0x12c] ss:$16 sps:$4 sm:$0xff]  }
 0x163   :  { %1485 = vmatprep.subr.bf16.mxu0 %v3227_v45  ;;  %1528 = vmatprep.subr.bf16.mxu1 %v3229_v56  ;;  %v3253_v45 = vld [vmem:[#allocation5 + $0x32c] ss:$16 sps:$4 sm:$0xff]   ;;  %v3257_v56 = vld [vmem:[#allocation5 + $0x128] ss:$16 sps:$4 sm:$0xff]  }
 0x166   :  { %1486 = vmatpush2.bf16.msra.mxu0 %v3233_v41  ;;  %1529 = vmatpush2.bf16.msra.mxu1 %v3235_v49  ;;  %v3259_v41 = vld [vmem:[#allocation5 + $0x328] ss:$16 sps:$4 sm:$0xff]   ;;  %v3263_v49 = vld [vmem:[#allocation5 + $0x10c] ss:$16 sps:$4 sm:$0xff]  }
 0x167   :  { %1487 = vmatprep.subr.bf16.mxu0 %v3239_v40  ;;  %1530 = vmatprep.subr.bf16.mxu1 %v3241_v47  ;;  %v3265_v40 = vld [vmem:[#allocation5 + $0x30c] ss:$16 sps:$4 sm:$0xff]   ;;  %v3269_v47 = vld [vmem:[#allocation5 + $0x108] ss:$16 sps:$4 sm:$0xff]  }
 0x16a   :  { %1488 = vmatpush2.bf16.msra.mxu0 %v3245_v43  ;;  %1531 = vmatpush2.bf16.msra.mxu1 %v3247_v37  ;;  %v3271_v43 = vld [vmem:[#allocation5 + $0x308] ss:$16 sps:$4 sm:$0xff]  }
 0x16b   :  { %1489 = vmatprep.subr.bf16.mxu0 %v3251_v51  ;;  %1532 = vmatprep.subr.bf16.mxu1 %v3253_v45 }
 0x16e   :  { %1490 = vmatpush2.bf16.msra.mxu0 %v3257_v56  ;;  %1533 = vmatpush2.bf16.msra.mxu1 %v3259_v41 }
 0x16f   :  { %1491 = vmatprep.subr.bf16.mxu0 %v3263_v49  ;;  %1534 = vmatprep.subr.bf16.mxu1 %v3265_v40 }
 0x172   :  { %1492 = vmatpush2.bf16.msra.mxu0 %v3269_v47  ;;  %1535 = vmatpush2.bf16.msra.mxu1 %v3271_v43 }
 0x173   :  { %1559 = vmatprep.subr.bf16.mxu0 %v2860_v1  ;;  %1602 = vmatprep.subr.bf16.mxu1 %v2862_v2  ;;  %v3591_v1 = vld [vmem:[#allocation12_spill] sm:$0xff]  ;;  %v3592_v2 = vld [vmem:[#allocation13_spill] sm:$0xff] }
 0x175   :  { %1494 = vmatmul.mubr.bf16.vlgmr.msra.gmra.mxu0 %v3089_v50  ;;  %1537 = vmatmul.mubr.bf16.vlgmr.msra.gmra.mxu1 %v3091_v58  ;;  %v3625_v50 = vld [vmem:[#allocation35_spill] sm:$0xff] }
 0x176   :  { %1560 = vmatpush1.bf16.msra.mxu0 %v2867_v4  ;;  %1603 = vmatpush1.bf16.msra.mxu1 %v2869_v5  ;;  %v3593_v4 = vld [vmem:[#allocation14_spill] sm:$0xff]  ;;  %v3594_v5 = vld [vmem:[#allocation15_spill] sm:$0xff] }
 0x177   :  { %1561 = vmatprep.subr.bf16.mxu0 %v2871_v6  ;;  %1604 = vmatprep.subr.bf16.mxu1 %v2875_v7  ;;  %v3595_v6 = vld [vmem:[#allocation16_spill] sm:$0xff]  ;;  %v3596_v7 = vld [vmem:[#allocation17_spill] sm:$0xff] }
 0x17a   :  { %1562 = vmatpush1.bf16.msra.mxu0 %v2877_v8  ;;  %1605 = vmatpush1.bf16.msra.mxu1 %v2879_v9  ;;  %v3597_v8 = vld [vmem:[#allocation18_spill] sm:$0xff]  ;;  %v3598_v9 = vld [vmem:[#allocation19_spill] sm:$0xff] }
 0x17b   :  { %1563 = vmatprep.subr.bf16.mxu0 %v2883_v10  ;;  %1606 = vmatprep.subr.bf16.mxu1 %v2887_v11  ;;  %v3599_v10 = vld [vmem:[#allocation20_spill] sm:$0xff]  ;;  %v3600_v11 = vld [vmem:[#allocation21_spill] sm:$0xff] }
 0x17e   :  { %1564 = vmatpush1.bf16.msra.mxu0 %v2889_v12  ;;  %1607 = vmatpush1.bf16.msra.mxu1 %v2891_v13  ;;  %v3601_v12 = vld [vmem:[#allocation22_spill] sm:$0xff]  ;;  %v3602_v13 = vld [vmem:[#allocation23_spill] sm:$0xff] }
 0x17f   :  { %1565 = vmatprep.subr.bf16.mxu0 %v2895_v14  ;;  %1608 = vmatprep.subr.bf16.mxu1 %v2899_v15  ;;  %v3603_v14 = vld [vmem:[#allocation24_spill] sm:$0xff]  ;;  %v3604_v15 = vld [vmem:[#allocation25_spill] sm:$0xff] }
 0x182   :  { %1566 = vmatpush1.bf16.msra.mxu0 %v2901_v16  ;;  %1609 = vmatpush1.bf16.msra.mxu1 %v2903_v17  ;;  %v3605_v16 = vld [vmem:[#allocation26_spill] sm:$0xff]  ;;  %v3606_v17 = vld [vmem:[#allocation27_spill] sm:$0xff] }
 0x183   :  { %1567 = vmatprep.subr.bf16.mxu0 %v2907_v18  ;;  %1610 = vmatprep.subr.bf16.mxu1 %v2911_v19  ;;  %v3607_v18 = vld [vmem:[#allocation28_spill] sm:$0xff]  ;;  %v3608_v19 = vld [vmem:[#allocation29_spill] sm:$0xff] }
 0x186   :  { %1568 = vmatpush1.bf16.msra.mxu0 %v2913_v20  ;;  %1611 = vmatpush1.bf16.msra.mxu1 %v2915_v21  ;;  %v3609_v20 = vld [vmem:[#allocation30_spill] sm:$0xff]  ;;  %v3610_v21 = vld [vmem:[#allocation31_spill] sm:$0xff] }
 0x187   :  { %1569 = vmatprep.subr.bf16.mxu0 %v2917_v22  ;;  %1612 = vmatprep.subr.bf16.mxu1 %v2919_v23  ;;  %v3611_v22 = vld [vmem:[#allocation33_spill] sm:$0xff]  ;;  %v3612_v23 = vld [vmem:[#allocation34_spill] sm:$0xff] }
 0x18a   :  { %1570 = vmatpush1.bf16.msra.mxu0 %v2925_v24  ;;  %1613 = vmatpush1.bf16.msra.mxu1 %v2927_v25  ;;  %v3613_v24 = vld [vmem:[#allocation36_spill] sm:$0xff]  ;;  %v3614_v25 = vld [vmem:[#allocation37_spill] sm:$0xff] }
 0x18b   :  { %1571 = vmatprep.subr.bf16.mxu0 %v2929_v26  ;;  %1614 = vmatprep.subr.bf16.mxu1 %v2931_v27  ;;  %v3615_v26 = vld [vmem:[#allocation39_spill] sm:$0xff]  ;;  %v3616_v27 = vld [vmem:[#allocation40_spill] sm:$0xff] }
 0x18e   :  { %1572 = vmatpush1.bf16.msra.mxu0 %v2937_v28  ;;  %1615 = vmatpush1.bf16.msra.mxu1 %v2939_v29  ;;  %v3617_v28 = vld [vmem:[#allocation42_spill] sm:$0xff]  ;;  %v3618_v29 = vld [vmem:[#allocation43_spill] sm:$0xff] }
 0x18f   :  { %1573 = vmatprep.subr.bf16.mxu0 %v2941_v30  ;;  %1616 = vmatprep.subr.bf16.mxu1 %v2943_v31  ;;  %v3619_v30 = vld [vmem:[#allocation44_spill] sm:$0xff]  ;;  %v3620_v31 = vld [vmem:[#allocation45_spill] sm:$0xff] }
 0x192   :  { %1574 = vmatpush1.bf16.msra.mxu0 %v2949_v32  ;;  %1617 = vmatpush1.bf16.msra.mxu1 %v2951_v33  ;;  %v3621_v32 = vld [vmem:[#allocation46_spill] sm:$0xff]  ;;  %v3622_v33 = vld [vmem:[#allocation47_spill] sm:$0xff] }
 0x193   :  { %1575 = vmatprep.subr.bf16.mxu0 %v2953_v34  ;;  %1618 = vmatprep.subr.bf16.mxu1 %v2955_v35  ;;  %v3623_v34 = vld [vmem:[#allocation32_spill] sm:$0xff] }
 0x194   :  { %v3624_v35 = vsub.s32 1, %v3623_v34 }
 0x196   :  { %1576 = vmatpush2.bf16.msra.mxu0 %v3591_v1  ;;  %1619 = vmatpush2.bf16.msra.mxu1 %v3592_v2  ;;  %v3348_v58 = vrot.slane %v3625_v50, %v3624_v35  ;;  %v3626_v1 = vsub.s32 0, %v3623_v34 }
 0x197   :  { %1577 = vmatprep.subr.bf16.mxu0 %v3593_v4  ;;  %1620 = vmatprep.subr.bf16.mxu1 %v3594_v5 }
 0x198   :  { %v3353_v2 = vrot.slane %v3625_v50, %v3626_v1 }
 0x19a   :  { %1578 = vmatpush2.bf16.msra.mxu0 %v3595_v6  ;;  %1621 = vmatpush2.bf16.msra.mxu1 %v3596_v7 }
 0x19b   :  { %1579 = vmatprep.subr.bf16.mxu0 %v3597_v8  ;;  %1622 = vmatprep.subr.bf16.mxu1 %v3598_v9 }
 0x19e   :  { %1580 = vmatpush2.bf16.msra.mxu0 %v3599_v10  ;;  %1623 = vmatpush2.bf16.msra.mxu1 %v3600_v11 }
 0x19f   :  { %1581 = vmatprep.subr.bf16.mxu0 %v3601_v12  ;;  %1624 = vmatprep.subr.bf16.mxu1 %v3602_v13 }
 0x1a2   :  { %1582 = vmatpush2.bf16.msra.mxu0 %v3603_v14  ;;  %1625 = vmatpush2.bf16.msra.mxu1 %v3604_v15 }
 0x1a3   :  { %1583 = vmatprep.subr.bf16.mxu0 %v3605_v16  ;;  %1626 = vmatprep.subr.bf16.mxu1 %v3606_v17 }
 0x1a6   :  { %1584 = vmatpush2.bf16.msra.mxu0 %v3607_v18  ;;  %1627 = vmatpush2.bf16.msra.mxu1 %v3608_v19 }
 0x1a7   :  { %1585 = vmatprep.subr.bf16.mxu0 %v3609_v20  ;;  %1628 = vmatprep.subr.bf16.mxu1 %v3610_v21 }
 0x1aa   :  { %1586 = vmatpush2.bf16.msra.mxu0 %v3611_v22  ;;  %1629 = vmatpush2.bf16.msra.mxu1 %v3612_v23 }
 0x1ab   :  { %1587 = vmatprep.subr.bf16.mxu0 %v3613_v24  ;;  %1630 = vmatprep.subr.bf16.mxu1 %v3614_v25 }
 0x1ae   :  { %1588 = vmatpush2.bf16.msra.mxu0 %v3615_v26  ;;  %1631 = vmatpush2.bf16.msra.mxu1 %v3616_v27 }
 0x1af   :  { %1589 = vmatprep.subr.bf16.mxu0 %v3617_v28  ;;  %1632 = vmatprep.subr.bf16.mxu1 %v3618_v29 }
 0x1b2   :  { %1590 = vmatpush2.bf16.msra.mxu0 %v3619_v30  ;;  %1633 = vmatpush2.bf16.msra.mxu1 %v3620_v31 }
 0x1b3   :  { %1645 = vmatprep.subr.bf16.mxu0 %v3621_v32  ;;  %1688 = vmatprep.subr.bf16.mxu1 %v3622_v33 }
 0x1f5   :  { %v1409_v4 = vpop.f32.mrf.mxu0  ;;  %v1452_v5 = vpop.f32.mrf.mxu1 }
 0x1f6   :  { %v1410_v9 = vadd.f32 %v1409_v4, %v3353_v2 }
 0x1f7   :  { %v1411_v6 = vpop.f32.mrf.mxu0  ;;  %v1454_v7 = vpop.f32.mrf.mxu1 }
 0x1f8   :  { %v1412_v8 = vadd.f32 %v1411_v6, %v3348_v58  ;;  %v1453_v17 = vadd.f32 %v1452_v5, %v1410_v9  ;;  %v3638_v5 = vld [vmem:[#allocation49_spill] sm:$0xff]  ;;  %v3639_v6 = vld [vmem:[#allocation50_spill] sm:$0xff]  ;;  %v3641_v9 = vld [vmem:[#allocation52_spill] sm:$0xff] }
 0x1f9   :  { %v1413_v10 = vpop.f32.mrf.mxu0  ;;  %v1456_v11 = vpop.f32.mrf.mxu1 }
 0x1fa   :  { %v1414_v12 = vadd.f32 %v1413_v10, %v3353_v2  ;;  %v1455_v14 = vadd.f32 %v1454_v7, %v1412_v8  ;;  %v1547_v23 = vmax.f32 %v1453_v17, 0.0  ;;  %v2681_v7 = vld [vmem:[#allocation7 + $0x38] sm:$0xff]   ;;  %v2682_v8 = vld [vmem:[#allocation7 + $0x70] sm:$0xff]  }
 0x1fb   :  { %v1415_v13 = vpop.f32.mrf.mxu0  ;;  %v1458_v18 = vpop.f32.mrf.mxu1  ;;  %v2683_v10 = vld [vmem:[#allocation7 + $0x30] sm:$0xff]   ;;  %v3646_v17 = vld [vmem:[#allocation57_spill] sm:$0xff] }
 0x1fc   :  { %v1457_v15 = vadd.f32 %v1456_v11, %v1414_v12  ;;  %v1416_v16 = vadd.f32 %v1415_v13, %v3348_v58  ;;  %v1548_v21 = vmax.f32 %v1455_v14, 0.0  ;;  %v2684_v11 = vld [vmem:[#allocation7 + $0x68] sm:$0xff]   ;;  %v3643_v12 = vld [vmem:[#allocation54_spill] sm:$0xff] }
 0x1fd   :  { %v3644_v13 = vld [vmem:[#allocation55_spill] sm:$0xff] }
 0x1fe   :  { %v1459_v19 = vadd.f32 %v1458_v18, %v1416_v16  ;;  %v1551_v20 = vmax.f32 %v1457_v15, 0.0  ;;  %v2685_v14 = vld [vmem:[#allocation7 + $0x28] sm:$0xff]   ;;  %v2686_v15 = vld [vmem:[#allocation7 + $0x60] sm:$0xff]   ;;  %v3645_v16 = vld [vmem:[#allocation56_spill] sm:$0xff] }
 0x1ff   :  { %v2687_v18 = vld [vmem:[#allocation7 + $0x20] sm:$0xff]  }
 0x200   :  { %v1552_v22 = vmax.f32 %v1459_v19, 0.0  ;;  %v1555_v25 = vpack.c.bf16 %v1551_v20, %v1547_v23  ;;  %v2688_v19 = vld [vmem:[#allocation7 + $0x58] sm:$0xff]   ;;  %v3647_v20 = vld [vmem:[#allocation58_spill] sm:$0xff]  ;;  %v3649_v23 = vld [vmem:[#allocation60_spill] sm:$0xff] }
 0x202   :  { %v1556_v24 = vpack.c.bf16 %v1552_v22, %v1548_v21  ;;  %v3648_v21 = vld [vmem:[#allocation59_spill] sm:$0xff]  ;;  %v2689_v22 = vld [vmem:[#allocation7 + $0x18] sm:$0xff]  }
 0x204   :  { %1591 = vmatprep.mubr.bf16.mxu0 %v1556_v24 }
 0x205   :  { %1592 = vmatmul.mubr.bf16.vlgmr.msra.gmra.mxu0 %v1555_v25 }
 0x206   :  { %1646 = vmatpush1.bf16.msra.mxu0 %v3085_v52  ;;  %1677 = vmatprep.mubr.bf16.mxu0 %v1556_v24  ;;  %v3627_v52 = vld [vmem:[#allocation67_spill] sm:$0xff]  ;;  %v3650_v24 = vld [vmem:[#allocation61_spill] sm:$0xff] }
 0x207   :  { %1647 = vmatprep.subr.bf16.mxu0 %v3093_v42  ;;  %v3628_v42 = vld [vmem:[#allocation69_spill] sm:$0xff] }
 0x20a   :  { %1648 = vmatpush1.bf16.msra.mxu0 %v3101_v39  ;;  %v3629_v39 = vld [vmem:[#allocation71_spill] sm:$0xff] }
 0x20b   :  { %1649 = vmatprep.subr.bf16.mxu0 %v3105_v38  ;;  %v3630_v38 = vld [vmem:[#allocation73_spill] sm:$0xff] }
 0x20e   :  { %1650 = vmatpush1.bf16.msra.mxu0 %v3113_v44  ;;  %v3631_v44 = vld [vmem:[#allocation75_spill] sm:$0xff] }
 0x20f   :  { %1651 = vmatprep.subr.bf16.mxu0 %v3119_v36 }
 0x212   :  { %1652 = vmatpush1.bf16.msra.mxu0 %v3125_v46 }
 0x213   :  { %1653 = vmatprep.subr.bf16.mxu0 %v3131_v48  ;;  %v3632_v48 = vld [vmem:[#allocation77_spill] sm:$0xff] }
 0x216   :  { %1654 = vmatpush1.bf16.msra.mxu0 %v3137_v53 }
 0x217   :  { %1655 = vmatprep.subr.bf16.mxu0 %v3143_v57 }
 0x21a   :  { %1656 = vmatpush1.bf16.msra.mxu0 %v3149_v62  ;;  %v3634_v62 = vld [vmem:[#allocation41_spill] sm:$0xff] }
 0x21b   :  { %1657 = vmatprep.subr.bf16.mxu0 %v3155_v0  ;;  %v3635_v0 = vld [vmem:[#allocation38_spill] sm:$0xff] }
 0x21e   :  { %1658 = vmatpush1.bf16.msra.mxu0 %v3161_v54 }
 0x21f   :  { %1659 = vmatprep.subr.bf16.mxu0 %v3167_v55 }
 0x222   :  { %1660 = vmatpush1.bf16.msra.mxu0 %v3173_v59  ;;  %v3633_v59 = vld [vmem:[#allocation79_spill] sm:$0xff] }
 0x223   :  { %1661 = vmatprep.subr.bf16.mxu0 %v3179_v63 }
 0x226   :  { %1662 = vmatpush2.bf16.msra.mxu0 %v3185_v3 }
 0x227   :  { %1663 = vmatprep.subr.bf16.mxu0 %v3191_v61 }
 0x22a   :  { %1664 = vmatpush2.bf16.msra.mxu0 %v3197_v60  ;;  %v3636_v60 = vld [vmem:[#allocation81_spill] sm:$0xff] }
 0x22b   :  { %1665 = vmatprep.subr.bf16.mxu0 %v3627_v52  ;;  %v3652_v52 = vld [vmem:[#allocation63_spill] sm:$0xff] }
 0x22e   :  { %1666 = vmatpush2.bf16.msra.mxu0 %v3628_v42  ;;  %v3653_v42 = vld [vmem:[#allocation64_spill] sm:$0xff] }
 0x22f   :  { %1667 = vmatprep.subr.bf16.mxu0 %v3629_v39  ;;  %v3654_v39 = vld [vmem:[#allocation65_spill] sm:$0xff] }
 0x232   :  { %1668 = vmatpush2.bf16.msra.mxu0 %v3630_v38  ;;  %v3655_v38 = vld [vmem:[#allocation66_spill] sm:$0xff] }
 0x233   :  { %1669 = vmatprep.subr.bf16.mxu0 %v3631_v44  ;;  %v3656_v44 = vld [vmem:[#allocation68_spill] sm:$0xff] }
 0x235   :  { %v1495_v36 = vpop.f32.mrf.mxu0  ;;  %v1538_v46 = vpop.f32.mrf.mxu1 }
 0x236   :  { %1670 = vmatpush2.bf16.msra.mxu0 %v3632_v48  ;;  %v1496_v3 = vadd.f32 %v1495_v36, %v3635_v0  ;;  %v3657_v36 = vld [vmem:[#allocation70_spill] sm:$0xff] }
 0x237   :  { %v1497_v53 = vpop.f32.mrf.mxu0  ;;  %v1540_v57 = vpop.f32.mrf.mxu1  ;;  %1671 = vmatprep.subr.bf16.mxu0 %v3633_v59  ;;  %v3659_v48 = vld [vmem:[#allocation74_spill] sm:$0xff]  ;;  %v3662_v59 = vld [vmem:[#allocation80_spill] sm:$0xff] }
 0x238   :  { %v1498_v63 = vadd.f32 %v1497_v53, %v3634_v62  ;;  %v1539_v30 = vadd.f32 %v1538_v46, %v1496_v3  ;;  %v3658_v46 = vld [vmem:[#allocation72_spill] sm:$0xff] }
 0x239   :  { %v1499_v54 = vpop.f32.mrf.mxu0  ;;  %v1542_v61 = vpop.f32.mrf.mxu1  ;;  %v3660_v53 = vld [vmem:[#allocation76_spill] sm:$0xff] }
 0x23a   :  { %v1500_v55 = vadd.f32 %v1499_v54, %v3635_v0  ;;  %1672 = vmatpush2.bf16.msra.mxu0 %v3636_v60  ;;  %v1541_v27 = vadd.f32 %v1540_v57, %v1498_v63  ;;  %v1549_v50 = vmax.f32 %v1539_v30, 0.0  ;;  %v3661_v57 = vld [vmem:[#allocation78_spill] sm:$0xff]  ;;  %v2690_v63 = vld [vmem:[#allocation7 + $0x50] sm:$0xff]   ;;  %v2692_v54 = vld [vmem:[#allocation7 + $0x48] sm:$0xff]  }
 0x23b   :  { %v1501_v26 = vpop.f32.mrf.mxu0  ;;  %1673 = vmatprep.subr.bf16.mxu0 %v3251_v51  ;;  %v1544_v31 = vpop.f32.mrf.mxu1  ;;  %v3637_v51 = vld [vmem:[#allocation48_spill] sm:$0xff]  ;;  %v2695_v60 = vld [vmem:[#allocation7] sm:$0xff]   ;;  %v2705_v30 = vld [vmem:[#allocation7 + $0x98] sm:$0xff]  }
 0x23c   :  { %v1543_v28 = vadd.f32 %v1542_v61, %v1500_v55  ;;  %v1502_v29 = vadd.f32 %v1501_v26, %v3634_v62  ;;  %v1550_v34 = vmax.f32 %v1541_v27, 0.0  ;;  %v2691_v3 = vld [vmem:[#allocation7 + $0x10] sm:$0xff]   ;;  %v2693_v61 = vld [vmem:[#allocation7 + $0x8] sm:$0xff]   ;;  %v2694_v55 = vld [vmem:[#allocation7 + $0x40] sm:$0xff]  }
 0x23d   :  { %v2701_v26 = vld [vmem:[#allocation7 + $0xa8] sm:$0xff]   ;;  %v2702_v27 = vld [vmem:[#allocation7 + $0xe0] sm:$0xff]  }
 0x23e   :  { %v1545_v32 = vadd.f32 %v1544_v31, %v1502_v29  ;;  %1674 = vmatpush2.bf16.msra.mxu0 %v3257_v56  ;;  %v1553_v33 = vmax.f32 %v1543_v28, 0.0  ;;  %v3640_v56 = vld [vmem:[#allocation51_spill] sm:$0xff]  ;;  %v2703_v28 = vld [vmem:[#allocation7 + $0xa0] sm:$0xff]   ;;  %v2704_v29 = vld [vmem:[#allocation7 + $0xd8] sm:$0xff]  }
 0x23f   :  { %1675 = vmatprep.subr.bf16.mxu0 %v3263_v49  ;;  %v2680_v49 = vld [vmem:[#allocation7 + $0x78] sm:$0xff]   ;;  %v2706_v31 = vld [vmem:[#allocation7 + $0xd0] sm:$0xff]  }
 0x240   :  { %v1554_v35 = vmax.f32 %v1545_v32, 0.0  ;;  %v1557_v4 = vpack.c.bf16 %v1553_v33, %v1549_v50  ;;  %v2707_v32 = vld [vmem:[#allocation7 + $0x90] sm:$0xff]   ;;  %v2708_v33 = vld [vmem:[#allocation7 + $0xc8] sm:$0xff]   ;;  %v2711_v50 = vld [vmem:[#allocation7 + $0x80] sm:$0xff]  }
 0x242   :  { %v1558_v1 = vpack.c.bf16 %v1554_v35, %v1550_v34  ;;  %1676 = vmatpush2.bf16.msra.mxu0 %v3269_v47  ;;  %v3642_v47 = vld [vmem:[#allocation53_spill] sm:$0xff]  ;;  %v2709_v34 = vld [vmem:[#allocation7 + $0x88] sm:$0xff]   ;;  %v2710_v35 = vld [vmem:[#allocation7 + $0xc0] sm:$0xff]  }
 0x243   :  { %2335 = vmatprep.subr.bf16.mxu0 %v2680_v49 }
 0x244   :  { %1634 = vmatprep.mubr.bf16.mxu1 %v1558_v1 }
 0x245   :  { %1635 = vmatmul.mubr.bf16.vlgmr.msra.gmra.mxu1 %v1557_v4  ;;  %1678 = vmatmul.mubr.bf16.vlgmr.msra.gmra.mxu0 %v1555_v25  ;;  %v3651_v25 = vld [vmem:[#allocation62_spill] sm:$0xff] }
 0x246   :  { %1689 = vmatpush1.bf16.msra.mxu1 %v3637_v51  ;;  %1720 = vmatprep.mubr.bf16.mxu1 %v1558_v1 }
 0x247   :  { %1690 = vmatprep.subr.bf16.mxu1 %v3638_v5  ;;  %2336 = vmatpush3.bf16.msra.mxu0 %v2681_v7 }
 0x248   :  { %2337 = vmatprep.subr.bf16.mxu0 %v2682_v8 }
 0x24a   :  { %1691 = vmatpush1.bf16.msra.mxu1 %v3639_v6 }
 0x24b   :  { %1692 = vmatprep.subr.bf16.mxu1 %v3640_v56  ;;  %2338 = vmatpush3.bf16.msra.mxu0 %v2683_v10 }
 0x24c   :  { %2339 = vmatprep.subr.bf16.mxu0 %v2684_v11 }
 0x24e   :  { %1693 = vmatpush1.bf16.msra.mxu1 %v3641_v9 }
 0x24f   :  { %1694 = vmatprep.subr.bf16.mxu1 %v3642_v47  ;;  %2340 = vmatpush3.bf16.msra.mxu0 %v2685_v14 }
 0x250   :  { %2341 = vmatprep.subr.bf16.mxu0 %v2686_v15 }
 0x252   :  { %1695 = vmatpush1.bf16.msra.mxu1 %v3643_v12 }
 0x253   :  { %1696 = vmatprep.subr.bf16.mxu1 %v3644_v13  ;;  %2342 = vmatpush3.bf16.msra.mxu0 %v2687_v18 }
 0x254   :  { %2343 = vmatprep.subr.bf16.mxu0 %v2688_v19 }
 0x256   :  { %1697 = vmatpush1.bf16.msra.mxu1 %v3645_v16 }
 0x257   :  { %1698 = vmatprep.subr.bf16.mxu1 %v3646_v17  ;;  %2344 = vmatpush3.bf16.msra.mxu0 %v2689_v22 }
 0x258   :  { %2345 = vmatprep.subr.bf16.mxu0 %v2690_v63 }
 0x25a   :  { %1699 = vmatpush1.bf16.msra.mxu1 %v3647_v20 }
 0x25b   :  { %1700 = vmatprep.subr.bf16.mxu1 %v3648_v21  ;;  %2346 = vmatpush3.bf16.msra.mxu0 %v2691_v3 }
 0x25c   :  { %2347 = vmatprep.subr.bf16.mxu0 %v2692_v54 }
 0x25e   :  { %1701 = vmatpush1.bf16.msra.mxu1 %v3649_v23 }
 0x25f   :  { %1702 = vmatprep.subr.bf16.mxu1 %v3650_v24  ;;  %2348 = vmatpush3.bf16.msra.mxu0 %v2693_v61 }
 0x260   :  { %2349 = vmatprep.subr.bf16.mxu0 %v2694_v55 }
 0x262   :  { %1703 = vmatpush1.bf16.msra.mxu1 %v3651_v25 }
 0x263   :  { %1704 = vmatprep.subr.bf16.mxu1 %v3652_v52  ;;  %2350 = vmatpush3.bf16.msra.mxu0 %v2695_v60 }
 0x266   :  { %1705 = vmatpush2.bf16.msra.mxu1 %v3653_v42 }
 0x267   :  { %1706 = vmatprep.subr.bf16.mxu1 %v3654_v39 }
 0x26a   :  { %1707 = vmatpush2.bf16.msra.mxu1 %v3655_v38 }
 0x26b   :  { %1708 = vmatprep.subr.bf16.mxu1 %v3656_v44 }
 0x26e   :  { %1709 = vmatpush2.bf16.msra.mxu1 %v3657_v36 }
 0x26f   :  { %1710 = vmatprep.subr.bf16.mxu1 %v3658_v46 }
 0x272   :  { %1711 = vmatpush2.bf16.msra.mxu1 %v3659_v48 }
 0x273   :  { %1712 = vmatprep.subr.bf16.mxu1 %v3660_v53 }
 0x276   :  { %1713 = vmatpush2.bf16.msra.mxu1 %v3661_v57 }
 0x277   :  { %1714 = vmatprep.subr.bf16.mxu1 %v3662_v59 }
 0x27a   :  { %1715 = vmatpush2.bf16.msra.mxu1 %v3247_v37  ;;  %v2697_v37 = vld [vmem:[#allocation7 + $0xb8] sm:$0xff]  }
 0x27b   :  { %1716 = vmatprep.subr.bf16.mxu1 %v3253_v45  ;;  %v2696_v45 = vld [vmem:[#allocation7 + $0xf8] sm:$0xff]  }
 0x27e   :  { %1717 = vmatpush2.bf16.msra.mxu1 %v3259_v41  ;;  %v2698_v41 = vld [vmem:[#allocation7 + $0xf0] sm:$0xff]  }
 0x27f   :  { %1718 = vmatprep.subr.bf16.mxu1 %v3265_v40  ;;  %v2699_v40 = vld [vmem:[#allocation7 + $0xb0] sm:$0xff]  }
 0x282   :  { %1719 = vmatpush2.bf16.msra.mxu1 %v3271_v43  ;;  %v2700_v43 = vld [vmem:[#allocation7 + $0xe8] sm:$0xff]  }
 0x283   :  { %2357 = vmatprep.subr.bf16.mxu1 %v2696_v45 }
 0x285   :  { %1721 = vmatmul.mubr.bf16.vlgmr.msra.gmra.mxu1 %v1557_v4 }
 0x286   :  { %2358 = vmatpush3.bf16.msra.mxu1 %v2697_v37 }
 0x287   :  { %2359 = vmatprep.subr.bf16.mxu1 %v2698_v41 }
 0x28a   :  { %2360 = vmatpush3.bf16.msra.mxu1 %v2699_v40 }
 0x28b   :  { %2361 = vmatprep.subr.bf16.mxu1 %v2700_v43 }
 0x28e   :  { %2362 = vmatpush3.bf16.msra.mxu1 %v2701_v26 }
 0x28f   :  { %2363 = vmatprep.subr.bf16.mxu1 %v2702_v27 }
 0x292   :  { %2364 = vmatpush3.bf16.msra.mxu1 %v2703_v28 }
 0x293   :  { %2365 = vmatprep.subr.bf16.mxu1 %v2704_v29 }
 0x296   :  { %2366 = vmatpush3.bf16.msra.mxu1 %v2705_v30 }
 0x297   :  { %2367 = vmatprep.subr.bf16.mxu1 %v2706_v31 }
 0x29a   :  { %2368 = vmatpush3.bf16.msra.mxu1 %v2707_v32 }
 0x29b   :  { %2369 = vmatprep.subr.bf16.mxu1 %v2708_v33 }
 0x29e   :  { %2370 = vmatpush3.bf16.msra.mxu1 %v2709_v34 }
 0x29f   :  { %2371 = vmatprep.subr.bf16.mxu1 %v2710_v35 }
 0x2a2   :  { %2372 = vmatpush3.bf16.msra.mxu1 %v2711_v50 }
 0x2c5   :  { %v1593_v1 = vpop.f32.mrf.mxu0 }
 0x2c6   :  { %v1594_v8 = vadd.f32 %v1593_v1, %v3353_v2 }
 0x2c7   :  { %v1595_v4 = vpop.f32.mrf.mxu0 }
 0x2c8   :  { %v1596_v49 = vadd.f32 %v1595_v4, %v3348_v58 }
 0x2c9   :  { %v1597_v51 = vpop.f32.mrf.mxu0 }
 0x2ca   :  { %v1598_v7 = vadd.f32 %v1597_v51, %v3353_v2 }
 0x2cb   :  { %v1599_v6 = vpop.f32.mrf.mxu0 }
 0x2cc   :  { %v1600_v47 = vadd.f32 %v1599_v6, %v3348_v58 }
 0x305   :  { %v1636_v5 = vpop.f32.mrf.mxu1  ;;  %v1679_v21 = vpop.f32.mrf.mxu0 }
 0x306   :  { %v1637_v12 = vadd.f32 %v1636_v5, %v1594_v8  ;;  %v1680_v42 = vadd.f32 %v1679_v21, %v3635_v0 }
 0x307   :  { %v1638_v56 = vpop.f32.mrf.mxu1  ;;  %v1681_v22 = vpop.f32.mrf.mxu0 }
 0x308   :  { %v1639_v10 = vadd.f32 %v1638_v56, %v1596_v49  ;;  %v1731_v18 = vmax.f32 %v1637_v12, 0.0  ;;  %v1682_v58 = vadd.f32 %v1681_v22, %v3634_v62 }
 0x309   :  { %v1640_v9 = vpop.f32.mrf.mxu1  ;;  %v1683_v23 = vpop.f32.mrf.mxu0 }
 0x30a   :  { %v1641_v11 = vadd.f32 %v1640_v9, %v1598_v7  ;;  %v1732_v16 = vmax.f32 %v1639_v10, 0.0  ;;  %v1684_v52 = vadd.f32 %v1683_v23, %v3635_v0 }
 0x30b   :  { %v1642_v13 = vpop.f32.mrf.mxu1  ;;  %v1685_v24 = vpop.f32.mrf.mxu0 }
 0x30c   :  { %v1643_v14 = vadd.f32 %v1642_v13, %v1600_v47  ;;  %v1735_v15 = vmax.f32 %v1641_v11, 0.0  ;;  %v1686_v38 = vadd.f32 %v1685_v24, %v3634_v62  ;;  %v2302_v62 = vld [vmem:[%s3445_s6] ss:$0 sm:$0xff] }
 0x30e   :  { %v1736_v17 = vmax.f32 %v1643_v14, 0.0  ;;  %v1739_v20 = vpack.c.bf16 %v1735_v15, %v1731_v18 }
 0x310   :  { %v1740_v19 = vpack.c.bf16 %v1736_v17, %v1732_v16 }
 0x312   :  { %2038 = vmatprep.mubr.bf16.mxu0 %v1740_v19 }
 0x313   :  { %2039 = vmatmul.mubr.bf16.vlgmr.msra.gmra.mxu0 %v1739_v20 }
 0x345   :  { %v1722_v2 = vpop.f32.mrf.mxu1 }
 0x346   :  { %v1723_v46 = vadd.f32 %v1722_v2, %v1680_v42 }
 0x347   :  { %v1724_v25 = vpop.f32.mrf.mxu1 }
 0x348   :  { %v1725_v44 = vadd.f32 %v1724_v25, %v1682_v58  ;;  %v1733_v3 = vmax.f32 %v1723_v46, 0.0 }
 0x349   :  { %v1726_v39 = vpop.f32.mrf.mxu1 }
 0x34a   :  { %v1727_v36 = vadd.f32 %v1726_v39, %v1684_v52  ;;  %v1734_v59 = vmax.f32 %v1725_v44, 0.0 }
 0x34b   :  { %v1728_v48 = vpop.f32.mrf.mxu1 }
 0x34c   :  { %v1729_v53 = vadd.f32 %v1728_v48, %v1686_v38  ;;  %v1737_v57 = vmax.f32 %v1727_v36, 0.0 }
 0x34e   :  { %v1738_v63 = vmax.f32 %v1729_v53, 0.0  ;;  %v1741_v61 = vpack.c.bf16 %v1737_v57, %v1733_v3 }
 0x350   :  { %v1742_v54 = vpack.c.bf16 %v1738_v63, %v1734_v59 }
 0x352   :  { %2079 = vmatprep.mubr.bf16.mxu1 %v1742_v54 }
 0x353   :  { %2080 = vmatmul.mubr.bf16.vlgmr.msra.gmra.mxu1 %v1741_v61 }
 0x3d3   :  { %v2351_v55 = vpop.f32.mrf.mxu0 }
 0x3d5   :  { %v2352_v60 = vpop.f32.mrf.mxu0 }
 0x3d6   :  { %v2353_v0 = vadd.f32 %v2352_v60, %v2351_v55 }
 0x3d7   :  { %v2354_v45 = vpop.f32.mrf.mxu0 }
 0x3d8   :  { %v2041_v43 = vadd.f32 %v2353_v0, %v2302_v62 }
 0x3d9   :  { %v2355_v37 = vpop.f32.mrf.mxu0 }
 0x3da   :  { %v2356_v26 = vadd.f32 %v2355_v37, %v2354_v45 }
 0x3dc   :  { %v2044_v31 = vadd.f32 %v2356_v26, %v2302_v62 }
 0x413   :  { %v2373_v41 = vpop.f32.mrf.mxu1 }
 0x415   :  { %v2374_v40 = vpop.f32.mrf.mxu1 }
 0x416   :  { %v2375_v27 = vadd.f32 %v2374_v40, %v2373_v41 }
 0x417   :  { %v2376_v28 = vpop.f32.mrf.mxu1 }
 0x418   :  { %v2082_v29 = vadd.f32 %v2375_v27, %v2041_v43 }
 0x419   :  { %v2377_v30 = vpop.f32.mrf.mxu1 }
 0x41a   :  { %2088 = vst [vmem:[#allocation8] sm:$0xff] %v2082_v29  ;;  %v2378_v32 = vadd.f32 %v2377_v30, %v2376_v28 }
 0x41c   :  { %v2085_v33 = vadd.f32 %v2378_v32, %v2044_v31 }
 0x41e   :  { %2089 = vst [vmem:[#allocation8 + $0x8] sm:$0xff] %v2085_v33 }
 0x41f   :  { %2783 = shalt.err (!%p2780_p5)
}
 0x420   :  { %s2806_s6 = smov 128   ;;  %s2807_s27 = smov 8  }
 0x421   :  { %2101 = dma.vmem_to_hbm [thread:$0]  %s2096_s25, 256, %s3446_s7, [#allocation4], %s2806_s6, %s2806_s6, %s2807_s27  }
 0x422   :  { %2796 = dma.done.wait [#allocation4], 256  }
 0x423   :  { %2797 = vsyncadd [#allocation4], 4294967040 }
 0x424   :  { %2105 = vsyncpa [#allocation3], 1 }
 0x425   :  { %2106 = vsyncpa [#allocation6], 1 }
 0x426   :  { %2107 = vsyncpa [#allocation4], 1 }

</bundles_post_ra>
